<compile_context>
chip_gen: v7x
topology: tpu7x:2x2x1
jax: 0.10.0
libtpu: 0.0.40
codegen_flags: <defaults>
</compile_context>

<pallas_src>
import jax
import jax.numpy as jnp
from jax import lax
from jax.experimental import pallas as pl
from jax.experimental.pallas import tpu as pltpu


# ---------------------------------------------------------------------------
# Fused Bottleneck kernel (one spatial tile of TH rows per grid step)
# ---------------------------------------------------------------------------
def _bottleneck_kernel(xm_ref, xt_ref, xb_ref,
                       w1_ref, w2_ref, w3_ref, sb12_ref, sb3_ref,
                       o_ref, h1_ref):
    THp2, Wp2, P = h1_ref.shape
    TH, W = THp2 - 2, Wp2 - 2
    i = pl.program_id(1)
    last = pl.num_programs(1) - 1

    # Hoisted weight / folded-BN loads (shared by all three stage1 call sites).
    w1 = w1_ref[...]
    s1, b1 = sb12_ref[0:1], sb12_ref[1:2]

    def stage1(x_rows):                       # (rows, Cin) bf16 -> (rows, P) bf16
        y = jnp.dot(x_rows, w1, preferred_element_type=jnp.float32)
        return jnp.maximum(y * s1 + b1, 0.0).astype(jnp.bfloat16)

    # --- Stage 1: conv1 (1x1) + bn1 + relu into the haloed VMEM slab.
    # Zero only the 1-pixel frame that stage1 does not overwrite.
    zcol = jnp.zeros((THp2, 1, P), jnp.bfloat16)
    h1_ref[:, 0:1, :] = zcol                  # left zero-pad column
    h1_ref[:, W + 1:W + 2, :] = zcol          # right zero-pad column
    h1_ref[1:TH + 1, 1:W + 1, :] = stage1(xm_ref[...]).reshape(TH, W, P)

    zrow = jnp.zeros((1, W, P), jnp.bfloat16)

    @pl.when(i == 0)                          # image top border -> zero padding
    def _():
        h1_ref[0:1, 1:W + 1, :] = zrow

    @pl.when(i > 0)                           # neighbour row above the tile
    def _():
        h1_ref[0:1, 1:W + 1, :] = stage1(xt_ref[...]).reshape(1, W, P)

    @pl.when(i == last)                       # image bottom border -> zero padding
    def _():
        h1_ref[TH + 1:TH + 2, 1:W + 1, :] = zrow

    @pl.when(i < last)                        # neighbour row below the tile
    def _():
        h1_ref[TH + 1:TH + 2, 1:W + 1, :] = stage1(xb_ref[...]).reshape(1, W, P)

    # --- Stage 2: conv2 (3x3, pad=1) as nine shifted K=P matmuls, accumulated
    # as an f32 VALUE (no scratch round trips, no im2col concatenation).
    s2, b2 = sb12_ref[2:3], sb12_ref[3:4]
    acc = None
    for dh in range(3):                       # short static loops, fully unrolled
        for dw in range(3):
            win = h1_ref[dh:dh + TH, dw:dw + W, :].reshape(TH * W, P)
            part = jnp.dot(win, w2_ref[dh * 3 + dw],
                           preferred_element_type=jnp.float32)
            acc = part if acc is None else acc + part
    y2 = jnp.maximum(acc * s2 + b2, 0.0).astype(jnp.bfloat16)   # (TH*W, P)

    # --- Stage 3: conv3 (1x1) + bn3 + identity residual + relu; bf16 store.
    s3, b3 = sb3_ref[0:1], sb3_ref[1:2]
    y3 = jnp.dot(y2, w3_ref[...], preferred_element_type=jnp.float32)
    y3 = y3 * s3 + b3 + xm_ref[...].astype(jnp.float32)
    o_ref[...] = jnp.maximum(y3, 0.0).astype(o_ref.dtype)


# ---------------------------------------------------------------------------
# Generation-aware tile-height selection
# ---------------------------------------------------------------------------
def _tpu_vmem_capacity_bytes():
    try:
        return int(pltpu.get_tpu_info().vmem_capacity_bytes)
    except Exception:
        return 64 << 20          # conservative fallback (v7x has the smallest VMEM)


def _pick_tile_h(N, H, W, Cin, P, Cout, vmem_cap, min_grid=4):
    """Largest divisor of H whose double-buffered residency fits ~3/8 of VMEM,
    with TH*W a multiple of 8 sublanes and (preferably) an even total grid so
    both v7x TensorCores get equal work."""
    budget = max((vmem_cap * 3) // 8, 8 << 20)     # ~24 MiB on v7x, ~48 MiB v5e/v6e
    weights = 2 * (Cin * P + 9 * P * P + P * Cout) * 2 + (4 * P + 2 * Cout) * 4

    def residency(th):
        return (2 * th * W * Cin * 2               # main input tile, dbl-buffered bf16
                + 2 * 2 * W * Cin * 2              # two halo rows, dbl-buffered
                + 2 * th * W * Cout * 2            # output tile, dbl-buffered bf16
                + (th + 2) * (W + 2) * P * 2       # haloed conv1-activation scratch
                + th * W * P * 4                   # live f32 conv2 accumulator value
                + weights)

    divisors = [d for d in range(H, 0, -1) if H % d == 0 and (d * W) % 8 == 0]
    if not divisors:
        divisors = [H]                             # whole-image-tile fallback
    fitting = [d for d in divisors if residency(d) <= budget] or [divisors[-1]]
    for d in fitting:                              # prefer an even total grid
        if N * (H // d) >= min_grid and (N * (H // d)) % 2 == 0:
            return d
    for d in fitting:
        if N * (H // d) >= min_grid:
            return d
    return fitting[0]


# ---------------------------------------------------------------------------
# Full Bottleneck forward (NCHW in / NCHW out, matching PyTorch)
# ---------------------------------------------------------------------------
def bottleneck_forward(x_nchw, params, *, tile_h=None):
    N, Cin, H, W = x_nchw.shape
    P = params["w1"].shape[1]            # planes
    Cout = params["w3"].shape[1]         # planes * 4
    assert Cout == Cin, "identity residual requires inplanes == planes * 4"

    vmem_cap = _tpu_vmem_capacity_bytes()
    TH = tile_h if tile_h is not None else _pick_tile_h(N, H, W, Cin, P, Cout, vmem_cap)
    assert H % TH == 0 and (TH * W) % 8 == 0
    n_h = H // TH

    # NCHW -> NHWC, bf16 activations (all matmuls accumulate in f32 in-kernel).
    x = jnp.transpose(x_nchw, (0, 2, 3, 1)).astype(jnp.bfloat16)
    xf = x.reshape(N * H * W, Cin)

    w1 = params["w1"].astype(jnp.bfloat16)                        # (Cin, P)
    w2 = params["w2"].astype(jnp.bfloat16).reshape(9, P, P)       # HWIO -> (kh*3+kw, cin, cout)
    w3 = params["w3"].astype(jnp.bfloat16)                        # (P, Cout)
    sb12 = jnp.concatenate([params["s1"], params["b1"],
                            params["s2"], params["b2"]], axis=0).astype(jnp.float32)
    sb3 = jnp.concatenate([params["s3"], params["b3"]], axis=0).astype(jnp.float32)

    out = pl.pallas_call(
        _bottleneck_kernel,
        out_shape=jax.ShapeDtypeStruct((N * H * W, Cout), jnp.bfloat16),
        grid=(N, n_h),
        in_specs=[
            # main spatial tile (conv1 input + residual)
            pl.BlockSpec((TH * W, Cin), lambda n, i: (n * n_h + i, 0)),
            # clamped neighbour rows above / below (3x3 halo); masked in-kernel
            pl.BlockSpec((W, Cin),
                         lambda n, i: (n * H + jnp.maximum(i * TH - 1, 0), 0)),
            pl.BlockSpec((W, Cin),
                         lambda n, i: (n * H + jnp.minimum((i + 1) * TH, H - 1), 0)),
            # weights / packed folded-BN params: resident across the whole grid
            pl.BlockSpec((Cin, P), lambda n, i: (0, 0)),
            pl.BlockSpec((9, P, P), lambda n, i: (0, 0, 0)),
            pl.BlockSpec((P, Cout), lambda n, i: (0, 0)),
            pl.BlockSpec((4, P), lambda n, i: (0, 0)),
            pl.BlockSpec((2, Cout), lambda n, i: (0, 0)),
        ],
        out_specs=pl.BlockSpec((TH * W, Cout), lambda n, i: (n * n_h + i, 0)),
        scratch_shapes=[
            # haloed conv1 output; lane dim = P (pad channels to >=128 for real
            # configs to get lane-dense stores -- the toy config is lane-sparse).
            pltpu.VMEM((TH + 2, W + 2, P), jnp.bfloat16),
        ],
        compiler_params=pltpu.CompilerParams(
            dimension_semantics=("parallel", "parallel"),
            vmem_limit_bytes=int(min((vmem_cap * 5) // 8, 100 << 20))),
    )(xf, xf, xf, w1, w2, w3, sb12, sb3)

    return jnp.transpose(out.reshape(N, H, W, Cout), (0, 3, 1, 2))   # -> NCHW (bf16)


# ---------------------------------------------------------------------------
# Pure-JAX reference (mirrors the kernel's bf16-inference quantization points)
# ---------------------------------------------------------------------------
def bottleneck_reference(x_nchw, params):
    f32, bf16 = jnp.float32, jnp.bfloat16
    hp = lax.Precision.HIGHEST
    x = jnp.transpose(x_nchw, (0, 2, 3, 1)).astype(bf16).astype(f32)
    w1 = params["w1"].astype(bf16).astype(f32)
    w2 = params["w2"].astype(bf16).astype(f32)
    w3 = params["w3"].astype(bf16).astype(f32)

    o = jnp.einsum("nhwc,cd->nhwd", x, w1, precision=hp)
    o = jnp.maximum(o * params["s1"] + params["b1"], 0.0).astype(bf16).astype(f32)
    o = lax.conv_general_dilated(
        o, w2, window_strides=(1, 1), padding=((1, 1), (1, 1)),
        dimension_numbers=("NHWC", "HWIO", "NHWC"), precision=hp)
    o = jnp.maximum(o * params["s2"] + params["b2"], 0.0).astype(bf16).astype(f32)
    o = jnp.einsum("nhwc,cd->nhwd", o, w3, precision=hp)
    o = jnp.maximum(o * params["s3"] + params["b3"] + x, 0.0)
    return jnp.transpose(o, (0, 3, 1, 2))


def fold_bn(gamma, beta, mean, var, eps=1e-5):
    scale = gamma / jnp.sqrt(var + eps)
    bias = beta - mean * scale
    return scale.reshape(1, -1), bias.reshape(1, -1)


if __name__ == "__main__":
    # Small shapes: inplanes = planes * 4 so the identity residual is valid.
    N, H, W = 2, 16, 16
    inplanes, planes = 16, 4

    key = jax.random.PRNGKey(0)
    keys = jax.random.split(key, 7)

    # Conv weights (stored in the layouts the kernel consumes).
    w1 = jax.random.normal(keys[0], (inplanes, planes), jnp.float32) * 0.1      # 1x1: (Cin, Cout)
    w2 = jax.random.normal(keys[1], (3, 3, planes, planes), jnp.float32) * 0.1  # 3x3: HWIO
    w3 = jax.random.normal(keys[2], (planes, planes * 4), jnp.float32) * 0.1    # 1x1: (Cin, Cout)

    # BatchNorm parameters (inference mode: folded running stats).
    def bn_params(k, c):
        ka, kb, kc, kd = jax.random.split(k, 4)
        gamma = 1.0 + 0.1 * jax.random.normal(ka, (c,), jnp.float32)
        beta = 0.1 * jax.random.normal(kb, (c,), jnp.float32)
        mean = 0.1 * jax.random.normal(kc, (c,), jnp.float32)
        var = jax.random.uniform(kd, (c,), jnp.float32, 0.5, 1.5)
        return gamma, beta, mean, var

    s1, b1 = fold_bn(*bn_params(keys[3], planes))
    s2, b2 = fold_bn(*bn_params(keys[4], planes))
    s3, b3 = fold_bn(*bn_params(keys[5], planes * 4))

    params = dict(w1=w1, s1=s1, b1=b1,
                  w2=w2, s2=s2, b2=b2,
                  w3=w3, s3=s3, b3=b3)

    x = jax.random.normal(keys[6], (N, inplanes, H, W), jnp.float32)  # NCHW like PyTorch

    fwd = jax.jit(lambda xx: bottleneck_forward(xx, params))
    out = jax.block_until_ready(fwd(x))

    ref = jax.block_until_ready(bottleneck_reference(x, params))
    assert out.shape == (N, inplanes, H, W)
    assert out.dtype == jnp.bfloat16
    # Tolerance covers the final bf16 output rounding (~0.4% relative).
    assert jnp.allclose(out.astype(jnp.float32), ref, rtol=2e-2, atol=2e-2), \
        "mismatch vs reference"

    print("KERNEL_OK")
</pallas_src>

<mosaic_0001>
module attributes {stable_mosaic.version = 11 : i64} {
  func.func @_bottleneck_kernel(%arg0: i32, %arg1: i32, %arg2: memref<128x16xbf16, #tpu.memory_space<vmem>>, %arg3: memref<16x16xbf16, #tpu.memory_space<vmem>>, %arg4: memref<16x16xbf16, #tpu.memory_space<vmem>>, %arg5: memref<16x4xbf16, #tpu.memory_space<vmem>>, %arg6: memref<9x4x4xbf16, #tpu.memory_space<vmem>>, %arg7: memref<4x16xbf16, #tpu.memory_space<vmem>>, %arg8: memref<4x4xf32, #tpu.memory_space<vmem>>, %arg9: memref<2x16xf32, #tpu.memory_space<vmem>>, %arg10: memref<128x16xbf16, #tpu.memory_space<vmem>>, %arg11: memref<10x18x4xbf16, #tpu.memory_space<vmem>>) attributes {dimension_semantics = [#tpu.dimension_semantics<parallel>, #tpu.dimension_semantics<parallel>], iteration_bounds = array<i64: 2, 2>, scalar_prefetch = 0 : i64, scratch_operands = 1 : i64, tpu.core_type = #tpu.core_type<tc>, window_params = [{transform_indices = @transform_0, window_bounds = array<i64: 128, 16>}, {transform_indices = @transform_1, window_bounds = array<i64: 16, 16>}, {transform_indices = @transform_2, window_bounds = array<i64: 16, 16>}, {pipeline_mode = #tpu.pipeline_mode<synchronous>, transform_indices = @transform_3, window_bounds = array<i64: 16, 4>}, {pipeline_mode = #tpu.pipeline_mode<synchronous>, transform_indices = @transform_4, window_bounds = array<i64: 9, 4, 4>}, {pipeline_mode = #tpu.pipeline_mode<synchronous>, transform_indices = @transform_5, window_bounds = array<i64: 4, 16>}, {pipeline_mode = #tpu.pipeline_mode<synchronous>, transform_indices = @transform_6, window_bounds = array<i64: 4, 4>}, {pipeline_mode = #tpu.pipeline_mode<synchronous>, transform_indices = @transform_7, window_bounds = array<i64: 2, 16>}, {transform_indices = @transform_8, window_bounds = array<i64: 128, 16>}]} {
    %c0 = arith.constant 0 : index
    %c0_0 = arith.constant 0 : index
    %0 = vector.load %arg5[%c0, %c0_0] : memref<16x4xbf16, #tpu.memory_space<vmem>>, vector<16x4xbf16>
    %c0_1 = arith.constant 0 : index
    %c0_2 = arith.constant 0 : index
    %1 = vector.load %arg8[%c0_1, %c0_2] : memref<4x4xf32, #tpu.memory_space<vmem>>, vector<1x4xf32>
    %c1 = arith.constant 1 : index
    %c0_3 = arith.constant 0 : index
    %2 = vector.load %arg8[%c1, %c0_3] : memref<4x4xf32, #tpu.memory_space<vmem>>, vector<1x4xf32>
    %cst = arith.constant 0.000000e+00 : bf16
    %3 = vector.broadcast %cst : bf16 to vector<10x1x4xbf16>
    %c0_4 = arith.constant 0 : index
    %c0_5 = arith.constant 0 : index
    %c0_6 = arith.constant 0 : index
    %4 = vector.load %arg11[%c0_4, %c0_5, %c0_6] : memref<10x18x4xbf16, #tpu.memory_space<vmem>>, vector<10x1x4xbf16>
    tpu.vector_store %arg11[%c0_4, %c0_5, %c0_6], %3 {strides = array<i32>} : memref<10x18x4xbf16, #tpu.memory_space<vmem>>, vector<10x1x4xbf16>,
    %c0_7 = arith.constant 0 : index
    %c17 = arith.constant 17 : index
    %c0_8 = arith.constant 0 : index
    %5 = vector.load %arg11[%c0_7, %c17, %c0_8] : memref<10x18x4xbf16, #tpu.memory_space<vmem>>, vector<10x1x4xbf16>
    tpu.vector_store %arg11[%c0_7, %c17, %c0_8], %3 {strides = array<i32>} : memref<10x18x4xbf16, #tpu.memory_space<vmem>>, vector<10x1x4xbf16>,
    %c0_9 = arith.constant 0 : index
    %c0_10 = arith.constant 0 : index
    %6 = vector.load %arg2[%c0_9, %c0_10] : memref<128x16xbf16, #tpu.memory_space<vmem>>, vector<128x16xbf16>
    %cst_11 = arith.constant dense<0.000000e+00> : vector<128x4xf32>
    %7 = tpu.matmul %6, %0, %cst_11 {dimension_numbers = #tpu.dot_dimension_numbers<[1], [0], [0], [1], [0, 0, 1, 1], [], []>} : vector<128x16xbf16>, vector<16x4xbf16>, vector<128x4xf32> -> vector<128x4xf32>
    %8 = vector.broadcast %1 : vector<1x4xf32> to vector<128x4xf32>
    %9 = arith.mulf %7, %8 : vector<128x4xf32>
    %10 = vector.broadcast %2 : vector<1x4xf32> to vector<128x4xf32>
    %11 = arith.addf %9, %10 : vector<128x4xf32>
    %cst_12 = arith.constant 0.000000e+00 : f32
    %12 = vector.broadcast %cst_12 : f32 to vector<128x4xf32>
    %13 = arith.maximumf %11, %12 : vector<128x4xf32>
    %14 = arith.truncf %13 : vector<128x4xf32> to vector<128x4xbf16>
    %15 = vector.shape_cast %14 : vector<128x4xbf16> to vector<8x16x4xbf16>
    %c1_13 = arith.constant 1 : index
    %c1_14 = arith.constant 1 : index
    %c0_15 = arith.constant 0 : index
    %16 = vector.load %arg11[%c1_13, %c1_14, %c0_15] : memref<10x18x4xbf16, #tpu.memory_space<vmem>>, vector<8x16x4xbf16>
    tpu.vector_store %arg11[%c1_13, %c1_14, %c0_15], %15 {strides = array<i32>} : memref<10x18x4xbf16, #tpu.memory_space<vmem>>, vector<8x16x4xbf16>,
    %cst_16 = arith.constant 0.000000e+00 : bf16
    %17 = vector.broadcast %cst_16 : bf16 to vector<1x16x4xbf16>
    %c0_i32 = arith.constant 0 : i32
    %18 = arith.cmpi eq, %arg1, %c0_i32 : i32
    %19 = arith.extui %18 : i1 to i32
    %c0_i32_17 = arith.constant 0 : i32
    %20 = arith.cmpi ne, %19, %c0_i32_17 : i32
    scf.if %20 {
      %c0_96 = arith.constant 0 : index
      %c1_97 = arith.constant 1 : index
      %c0_98 = arith.constant 0 : index
      %107 = vector.load %arg11[%c0_96, %c1_97, %c0_98] : memref<10x18x4xbf16, #tpu.memory_space<vmem>>, vector<1x16x4xbf16>
      tpu.vector_store %arg11[%c0_96, %c1_97, %c0_98], %17 {strides = array<i32>} : memref<10x18x4xbf16, #tpu.memory_space<vmem>>, vector<1x16x4xbf16>,
    } else {
    }
    %c0_i32_18 = arith.constant 0 : i32
    %21 = arith.cmpi sgt, %arg1, %c0_i32_18 : i32
    %22 = arith.extui %21 : i1 to i32
    %c0_i32_19 = arith.constant 0 : i32
    %23 = arith.cmpi ne, %22, %c0_i32_19 : i32
    scf.if %23 {
      %c0_96 = arith.constant 0 : index
      %c0_97 = arith.constant 0 : index
      %107 = vector.load %arg3[%c0_96, %c0_97] : memref<16x16xbf16, #tpu.memory_space<vmem>>, vector<16x16xbf16>
      %cst_98 = arith.constant dense<0.000000e+00> : vector<16x4xf32>
      %108 = tpu.matmul %107, %0, %cst_98 {dimension_numbers = #tpu.dot_dimension_numbers<[1], [0], [0], [1], [0, 0, 1, 1], [], []>} : vector<16x16xbf16>, vector<16x4xbf16>, vector<16x4xf32> -> vector<16x4xf32>
      %109 = vector.broadcast %1 : vector<1x4xf32> to vector<16x4xf32>
      %110 = arith.mulf %108, %109 : vector<16x4xf32>
      %111 = vector.broadcast %2 : vector<1x4xf32> to vector<16x4xf32>
      %112 = arith.addf %110, %111 : vector<16x4xf32>
      %cst_99 = arith.constant 0.000000e+00 : f32
      %113 = vector.broadcast %cst_99 : f32 to vector<16x4xf32>
      %114 = arith.maximumf %112, %113 : vector<16x4xf32>
      %115 = arith.truncf %114 : vector<16x4xf32> to vector<16x4xbf16>
      %116 = vector.shape_cast %115 : vector<16x4xbf16> to vector<1x16x4xbf16>
      %c0_100 = arith.constant 0 : index
      %c1_101 = arith.constant 1 : index
      %c0_102 = arith.constant 0 : index
      %117 = vector.load %arg11[%c0_100, %c1_101, %c0_102] : memref<10x18x4xbf16, #tpu.memory_space<vmem>>, vector<1x16x4xbf16>
      tpu.vector_store %arg11[%c0_100, %c1_101, %c0_102], %116 {strides = array<i32>} : memref<10x18x4xbf16, #tpu.memory_space<vmem>>, vector<1x16x4xbf16>,
    } else {
    }
    %c1_i32 = arith.constant 1 : i32
    %24 = arith.cmpi eq, %arg1, %c1_i32 : i32
    %25 = arith.extui %24 : i1 to i32
    %c0_i32_20 = arith.constant 0 : i32
    %26 = arith.cmpi ne, %25, %c0_i32_20 : i32
    scf.if %26 {
      %c9 = arith.constant 9 : index
      %c1_96 = arith.constant 1 : index
      %c0_97 = arith.constant 0 : index
      %107 = vector.load %arg11[%c9, %c1_96, %c0_97] : memref<10x18x4xbf16, #tpu.memory_space<vmem>>, vector<1x16x4xbf16>
      tpu.vector_store %arg11[%c9, %c1_96, %c0_97], %17 {strides = array<i32>} : memref<10x18x4xbf16, #tpu.memory_space<vmem>>, vector<1x16x4xbf16>,
    } else {
    }
    %c1_i32_21 = arith.constant 1 : i32
    %27 = arith.cmpi slt, %arg1, %c1_i32_21 : i32
    %28 = arith.extui %27 : i1 to i32
    %c0_i32_22 = arith.constant 0 : i32
    %29 = arith.cmpi ne, %28, %c0_i32_22 : i32
    scf.if %29 {
      %c0_96 = arith.constant 0 : index
      %c0_97 = arith.constant 0 : index
      %107 = vector.load %arg4[%c0_96, %c0_97] : memref<16x16xbf16, #tpu.memory_space<vmem>>, vector<16x16xbf16>
      %cst_98 = arith.constant dense<0.000000e+00> : vector<16x4xf32>
      %108 = tpu.matmul %107, %0, %cst_98 {dimension_numbers = #tpu.dot_dimension_numbers<[1], [0], [0], [1], [0, 0, 1, 1], [], []>} : vector<16x16xbf16>, vector<16x4xbf16>, vector<16x4xf32> -> vector<16x4xf32>
      %109 = vector.broadcast %1 : vector<1x4xf32> to vector<16x4xf32>
      %110 = arith.mulf %108, %109 : vector<16x4xf32>
      %111 = vector.broadcast %2 : vector<1x4xf32> to vector<16x4xf32>
      %112 = arith.addf %110, %111 : vector<16x4xf32>
      %cst_99 = arith.constant 0.000000e+00 : f32
      %113 = vector.broadcast %cst_99 : f32 to vector<16x4xf32>
      %114 = arith.maximumf %112, %113 : vector<16x4xf32>
      %115 = arith.truncf %114 : vector<16x4xf32> to vector<16x4xbf16>
      %116 = vector.shape_cast %115 : vector<16x4xbf16> to vector<1x16x4xbf16>
      %c9 = arith.constant 9 : index
      %c1_100 = arith.constant 1 : index
      %c0_101 = arith.constant 0 : index
      %117 = vector.load %arg11[%c9, %c1_100, %c0_101] : memref<10x18x4xbf16, #tpu.memory_space<vmem>>, vector<1x16x4xbf16>
      tpu.vector_store %arg11[%c9, %c1_100, %c0_101], %116 {strides = array<i32>} : memref<10x18x4xbf16, #tpu.memory_space<vmem>>, vector<1x16x4xbf16>,
    } else {
    }
    %c2 = arith.constant 2 : index
    %c0_23 = arith.constant 0 : index
    %30 = vector.load %arg8[%c2, %c0_23] : memref<4x4xf32, #tpu.memory_space<vmem>>, vector<1x4xf32>
    %c3 = arith.constant 3 : index
    %c0_24 = arith.constant 0 : index
    %31 = vector.load %arg8[%c3, %c0_24] : memref<4x4xf32, #tpu.memory_space<vmem>>, vector<1x4xf32>
    %c0_25 = arith.constant 0 : index
    %c0_26 = arith.constant 0 : index
    %c0_27 = arith.constant 0 : index
    %32 = vector.load %arg11[%c0_25, %c0_26, %c0_27] : memref<10x18x4xbf16, #tpu.memory_space<vmem>>, vector<8x16x4xbf16>
    %33 = vector.shape_cast %32 : vector<8x16x4xbf16> to vector<128x4xbf16>
    %c0_28 = arith.constant 0 : index
    %c0_29 = arith.constant 0 : index
    %c0_30 = arith.constant 0 : index
    %34 = vector.load %arg6[%c0_28, %c0_29, %c0_30] : memref<9x4x4xbf16, #tpu.memory_space<vmem>>, vector<1x4x4xbf16>
    %35 = vector.shape_cast %34 : vector<1x4x4xbf16> to vector<4x4xbf16>
    %cst_31 = arith.constant dense<0.000000e+00> : vector<128x4xf32>
    %36 = tpu.matmul %33, %35, %cst_31 {dimension_numbers = #tpu.dot_dimension_numbers<[1], [0], [0], [1], [0, 0, 1, 1], [], []>} : vector<128x4xbf16>, vector<4x4xbf16>, vector<128x4xf32> -> vector<128x4xf32>
    %c0_32 = arith.constant 0 : index
    %c1_33 = arith.constant 1 : index
    %c0_34 = arith.constant 0 : index
    %37 = vector.load %arg11[%c0_32, %c1_33, %c0_34] : memref<10x18x4xbf16, #tpu.memory_space<vmem>>, vector<8x16x4xbf16>
    %38 = vector.shape_cast %37 : vector<8x16x4xbf16> to vector<128x4xbf16>
    %c1_35 = arith.constant 1 : index
    %c0_36 = arith.constant 0 : index
    %c0_37 = arith.constant 0 : index
    %39 = vector.load %arg6[%c1_35, %c0_36, %c0_37] : memref<9x4x4xbf16, #tpu.memory_space<vmem>>, vector<1x4x4xbf16>
    %40 = vector.shape_cast %39 : vector<1x4x4xbf16> to vector<4x4xbf16>
    %cst_38 = arith.constant dense<0.000000e+00> : vector<128x4xf32>
    %41 = tpu.matmul %38, %40, %cst_38 {dimension_numbers = #tpu.dot_dimension_numbers<[1], [0], [0], [1], [0, 0, 1, 1], [], []>} : vector<128x4xbf16>, vector<4x4xbf16>, vector<128x4xf32> -> vector<128x4xf32>
    %42 = arith.addf %36, %41 : vector<128x4xf32>
    %c0_39 = arith.constant 0 : index
    %c2_40 = arith.constant 2 : index
    %c0_41 = arith.constant 0 : index
    %43 = vector.load %arg11[%c0_39, %c2_40, %c0_41] : memref<10x18x4xbf16, #tpu.memory_space<vmem>>, vector<8x16x4xbf16>
    %44 = vector.shape_cast %43 : vector<8x16x4xbf16> to vector<128x4xbf16>
    %c2_42 = arith.constant 2 : index
    %c0_43 = arith.constant 0 : index
    %c0_44 = arith.constant 0 : index
    %45 = vector.load %arg6[%c2_42, %c0_43, %c0_44] : memref<9x4x4xbf16, #tpu.memory_space<vmem>>, vector<1x4x4xbf16>
    %46 = vector.shape_cast %45 : vector<1x4x4xbf16> to vector<4x4xbf16>
    %cst_45 = arith.constant dense<0.000000e+00> : vector<128x4xf32>
    %47 = tpu.matmul %44, %46, %cst_45 {dimension_numbers = #tpu.dot_dimension_numbers<[1], [0], [0], [1], [0, 0, 1, 1], [], []>} : vector<128x4xbf16>, vector<4x4xbf16>, vector<128x4xf32> -> vector<128x4xf32>
    %48 = arith.addf %42, %47 : vector<128x4xf32>
    %c1_46 = arith.constant 1 : index
    %c0_47 = arith.constant 0 : index
    %c0_48 = arith.constant 0 : index
    %49 = vector.load %arg11[%c1_46, %c0_47, %c0_48] : memref<10x18x4xbf16, #tpu.memory_space<vmem>>, vector<8x16x4xbf16>
    %50 = vector.shape_cast %49 : vector<8x16x4xbf16> to vector<128x4xbf16>
    %c3_49 = arith.constant 3 : index
    %c0_50 = arith.constant 0 : index
    %c0_51 = arith.constant 0 : index
    %51 = vector.load %arg6[%c3_49, %c0_50, %c0_51] : memref<9x4x4xbf16, #tpu.memory_space<vmem>>, vector<1x4x4xbf16>
    %52 = vector.shape_cast %51 : vector<1x4x4xbf16> to vector<4x4xbf16>
    %cst_52 = arith.constant dense<0.000000e+00> : vector<128x4xf32>
    %53 = tpu.matmul %50, %52, %cst_52 {dimension_numbers = #tpu.dot_dimension_numbers<[1], [0], [0], [1], [0, 0, 1, 1], [], []>} : vector<128x4xbf16>, vector<4x4xbf16>, vector<128x4xf32> -> vector<128x4xf32>
    %54 = arith.addf %48, %53 : vector<128x4xf32>
    %c1_53 = arith.constant 1 : index
    %c1_54 = arith.constant 1 : index
    %c0_55 = arith.constant 0 : index
    %55 = vector.load %arg11[%c1_53, %c1_54, %c0_55] : memref<10x18x4xbf16, #tpu.memory_space<vmem>>, vector<8x16x4xbf16>
    %56 = vector.shape_cast %55 : vector<8x16x4xbf16> to vector<128x4xbf16>
    %c4 = arith.constant 4 : index
    %c0_56 = arith.constant 0 : index
    %c0_57 = arith.constant 0 : index
    %57 = vector.load %arg6[%c4, %c0_56, %c0_57] : memref<9x4x4xbf16, #tpu.memory_space<vmem>>, vector<1x4x4xbf16>
    %58 = vector.shape_cast %57 : vector<1x4x4xbf16> to vector<4x4xbf16>
    %cst_58 = arith.constant dense<0.000000e+00> : vector<128x4xf32>
    %59 = tpu.matmul %56, %58, %cst_58 {dimension_numbers = #tpu.dot_dimension_numbers<[1], [0], [0], [1], [0, 0, 1, 1], [], []>} : vector<128x4xbf16>, vector<4x4xbf16>, vector<128x4xf32> -> vector<128x4xf32>
    %60 = arith.addf %54, %59 : vector<128x4xf32>
    %c1_59 = arith.constant 1 : index
    %c2_60 = arith.constant 2 : index
    %c0_61 = arith.constant 0 : index
    %61 = vector.load %arg11[%c1_59, %c2_60, %c0_61] : memref<10x18x4xbf16, #tpu.memory_space<vmem>>, vector<8x16x4xbf16>
    %62 = vector.shape_cast %61 : vector<8x16x4xbf16> to vector<128x4xbf16>
    %c5 = arith.constant 5 : index
    %c0_62 = arith.constant 0 : index
    %c0_63 = arith.constant 0 : index
    %63 = vector.load %arg6[%c5, %c0_62, %c0_63] : memref<9x4x4xbf16, #tpu.memory_space<vmem>>, vector<1x4x4xbf16>
    %64 = vector.shape_cast %63 : vector<1x4x4xbf16> to vector<4x4xbf16>
    %cst_64 = arith.constant dense<0.000000e+00> : vector<128x4xf32>
    %65 = tpu.matmul %62, %64, %cst_64 {dimension_numbers = #tpu.dot_dimension_numbers<[1], [0], [0], [1], [0, 0, 1, 1], [], []>} : vector<128x4xbf16>, vector<4x4xbf16>, vector<128x4xf32> -> vector<128x4xf32>
    %66 = arith.addf %60, %65 : vector<128x4xf32>
    %c2_65 = arith.constant 2 : index
    %c0_66 = arith.constant 0 : index
    %c0_67 = arith.constant 0 : index
    %67 = vector.load %arg11[%c2_65, %c0_66, %c0_67] : memref<10x18x4xbf16, #tpu.memory_space<vmem>>, vector<8x16x4xbf16>
    %68 = vector.shape_cast %67 : vector<8x16x4xbf16> to vector<128x4xbf16>
    %c6 = arith.constant 6 : index
    %c0_68 = arith.constant 0 : index
    %c0_69 = arith.constant 0 : index
    %69 = vector.load %arg6[%c6, %c0_68, %c0_69] : memref<9x4x4xbf16, #tpu.memory_space<vmem>>, vector<1x4x4xbf16>
    %70 = vector.shape_cast %69 : vector<1x4x4xbf16> to vector<4x4xbf16>
    %cst_70 = arith.constant dense<0.000000e+00> : vector<128x4xf32>
    %71 = tpu.matmul %68, %70, %cst_70 {dimension_numbers = #tpu.dot_dimension_numbers<[1], [0], [0], [1], [0, 0, 1, 1], [], []>} : vector<128x4xbf16>, vector<4x4xbf16>, vector<128x4xf32> -> vector<128x4xf32>
    %72 = arith.addf %66, %71 : vector<128x4xf32>
    %c2_71 = arith.constant 2 : index
    %c1_72 = arith.constant 1 : index
    %c0_73 = arith.constant 0 : index
    %73 = vector.load %arg11[%c2_71, %c1_72, %c0_73] : memref<10x18x4xbf16, #tpu.memory_space<vmem>>, vector<8x16x4xbf16>
    %74 = vector.shape_cast %73 : vector<8x16x4xbf16> to vector<128x4xbf16>
    %c7 = arith.constant 7 : index
    %c0_74 = arith.constant 0 : index
    %c0_75 = arith.constant 0 : index
    %75 = vector.load %arg6[%c7, %c0_74, %c0_75] : memref<9x4x4xbf16, #tpu.memory_space<vmem>>, vector<1x4x4xbf16>
    %76 = vector.shape_cast %75 : vector<1x4x4xbf16> to vector<4x4xbf16>
    %cst_76 = arith.constant dense<0.000000e+00> : vector<128x4xf32>
    %77 = tpu.matmul %74, %76, %cst_76 {dimension_numbers = #tpu.dot_dimension_numbers<[1], [0], [0], [1], [0, 0, 1, 1], [], []>} : vector<128x4xbf16>, vector<4x4xbf16>, vector<128x4xf32> -> vector<128x4xf32>
    %78 = arith.addf %72, %77 : vector<128x4xf32>
    %c2_77 = arith.constant 2 : index
    %c2_78 = arith.constant 2 : index
    %c0_79 = arith.constant 0 : index
    %79 = vector.load %arg11[%c2_77, %c2_78, %c0_79] : memref<10x18x4xbf16, #tpu.memory_space<vmem>>, vector<8x16x4xbf16>
    %80 = vector.shape_cast %79 : vector<8x16x4xbf16> to vector<128x4xbf16>
    %c8 = arith.constant 8 : index
    %c0_80 = arith.constant 0 : index
    %c0_81 = arith.constant 0 : index
    %81 = vector.load %arg6[%c8, %c0_80, %c0_81] : memref<9x4x4xbf16, #tpu.memory_space<vmem>>, vector<1x4x4xbf16>
    %82 = vector.shape_cast %81 : vector<1x4x4xbf16> to vector<4x4xbf16>
    %cst_82 = arith.constant dense<0.000000e+00> : vector<128x4xf32>
    %83 = tpu.matmul %80, %82, %cst_82 {dimension_numbers = #tpu.dot_dimension_numbers<[1], [0], [0], [1], [0, 0, 1, 1], [], []>} : vector<128x4xbf16>, vector<4x4xbf16>, vector<128x4xf32> -> vector<128x4xf32>
    %84 = arith.addf %78, %83 : vector<128x4xf32>
    %85 = vector.broadcast %30 : vector<1x4xf32> to vector<128x4xf32>
    %86 = arith.mulf %84, %85 : vector<128x4xf32>
    %87 = vector.broadcast %31 : vector<1x4xf32> to vector<128x4xf32>
    %88 = arith.addf %86, %87 : vector<128x4xf32>
    %cst_83 = arith.constant 0.000000e+00 : f32
    %89 = vector.broadcast %cst_83 : f32 to vector<128x4xf32>
    %90 = arith.maximumf %88, %89 : vector<128x4xf32>
    %91 = arith.truncf %90 : vector<128x4xf32> to vector<128x4xbf16>
    %c0_84 = arith.constant 0 : index
    %c0_85 = arith.constant 0 : index
    %92 = vector.load %arg9[%c0_84, %c0_85] : memref<2x16xf32, #tpu.memory_space<vmem>>, vector<1x16xf32>
    %c1_86 = arith.constant 1 : index
    %c0_87 = arith.constant 0 : index
    %93 = vector.load %arg9[%c1_86, %c0_87] : memref<2x16xf32, #tpu.memory_space<vmem>>, vector<1x16xf32>
    %c0_88 = arith.constant 0 : index
    %c0_89 = arith.constant 0 : index
    %94 = vector.load %arg7[%c0_88, %c0_89] : memref<4x16xbf16, #tpu.memory_space<vmem>>, vector<4x16xbf16>
    %cst_90 = arith.constant dense<0.000000e+00> : vector<128x16xf32>
    %95 = tpu.matmul %91, %94, %cst_90 {dimension_numbers = #tpu.dot_dimension_numbers<[1], [0], [0], [1], [0, 0, 1, 1], [], []>} : vector<128x4xbf16>, vector<4x16xbf16>, vector<128x16xf32> -> vector<128x16xf32>
    %96 = vector.broadcast %92 : vector<1x16xf32> to vector<128x16xf32>
    %97 = arith.mulf %95, %96 : vector<128x16xf32>
    %98 = vector.broadcast %93 : vector<1x16xf32> to vector<128x16xf32>
    %99 = arith.addf %97, %98 : vector<128x16xf32>
    %c0_91 = arith.constant 0 : index
    %c0_92 = arith.constant 0 : index
    %100 = vector.load %arg2[%c0_91, %c0_92] : memref<128x16xbf16, #tpu.memory_space<vmem>>, vector<128x16xbf16>
    %101 = arith.extf %100 : vector<128x16xbf16> to vector<128x16xf32>
    %102 = arith.addf %99, %101 : vector<128x16xf32>
    %cst_93 = arith.constant 0.000000e+00 : f32
    %103 = vector.broadcast %cst_93 : f32 to vector<128x16xf32>
    %104 = arith.maximumf %102, %103 : vector<128x16xf32>
    %105 = arith.truncf %104 : vector<128x16xf32> to vector<128x16xbf16>
    %c0_94 = arith.constant 0 : index
    %c0_95 = arith.constant 0 : index
    %106 = vector.load %arg10[%c0_94, %c0_95] : memref<128x16xbf16, #tpu.memory_space<vmem>>, vector<128x16xbf16>
    tpu.vector_store %arg10[%c0_94, %c0_95], %105 {strides = array<i32>} : memref<128x16xbf16, #tpu.memory_space<vmem>>, vector<128x16xbf16>,
    return
  }
  func.func @transform_0(%arg0: i32, %arg1: i32) -> (i32, i32) {
    %c2_i32 = arith.constant 2 : i32
    %0 = arith.muli %arg0, %c2_i32 : i32
    %1 = arith.addi %0, %arg1 : i32
    %c0_i32 = arith.constant 0 : i32
    %c0_i32_0 = arith.constant 0 : i32
    return %1, %c0_i32 : i32, i32
  }
  func.func @transform_1(%arg0: i32, %arg1: i32) -> (i32, i32) {
    %c16_i32 = arith.constant 16 : i32
    %0 = arith.muli %arg0, %c16_i32 : i32
    %c8_i32 = arith.constant 8 : i32
    %1 = arith.muli %arg1, %c8_i32 : i32
    %c1_i32 = arith.constant 1 : i32
    %2 = arith.subi %1, %c1_i32 : i32
    %c0_i32 = arith.constant 0 : i32
    %3 = arith.maxsi %2, %c0_i32 : i32
    %4 = arith.addi %0, %3 : i32
    %c0_i32_0 = arith.constant 0 : i32
    %c0_i32_1 = arith.constant 0 : i32
    return %4, %c0_i32_0 : i32, i32
  }
  func.func @transform_2(%arg0: i32, %arg1: i32) -> (i32, i32) {
    %c16_i32 = arith.constant 16 : i32
    %0 = arith.muli %arg0, %c16_i32 : i32
    %c1_i32 = arith.constant 1 : i32
    %1 = arith.addi %arg1, %c1_i32 : i32
    %c8_i32 = arith.constant 8 : i32
    %2 = arith.muli %1, %c8_i32 : i32
    %c15_i32 = arith.constant 15 : i32
    %3 = arith.minsi %2, %c15_i32 : i32
    %4 = arith.addi %0, %3 : i32
    %c0_i32 = arith.constant 0 : i32
    %c0_i32_0 = arith.constant 0 : i32
    return %4, %c0_i32 : i32, i32
  }
  func.func @transform_3(%arg0: i32, %arg1: i32) -> (i32, i32) {
    %c0_i32 = arith.constant 0 : i32
    %c0_i32_0 = arith.constant 0 : i32
    %c0_i32_1 = arith.constant 0 : i32
    return %c0_i32, %c0_i32_0 : i32, i32
  }
  func.func @transform_4(%arg0: i32, %arg1: i32) -> (i32, i32, i32) {
    %c0_i32 = arith.constant 0 : i32
    %c0_i32_0 = arith.constant 0 : i32
    %c0_i32_1 = arith.constant 0 : i32
    %c0_i32_2 = arith.constant 0 : i32
    return %c0_i32, %c0_i32_0, %c0_i32_1 : i32, i32, i32
  }
  func.func @transform_5(%arg0: i32, %arg1: i32) -> (i32, i32) {
    %c0_i32 = arith.constant 0 : i32
    %c0_i32_0 = arith.constant 0 : i32
    %c0_i32_1 = arith.constant 0 : i32
    return %c0_i32, %c0_i32_0 : i32, i32
  }
  func.func @transform_6(%arg0: i32, %arg1: i32) -> (i32, i32) {
    %c0_i32 = arith.constant 0 : i32
    %c0_i32_0 = arith.constant 0 : i32
    %c0_i32_1 = arith.constant 0 : i32
    return %c0_i32, %c0_i32_0 : i32, i32
  }
  func.func @transform_7(%arg0: i32, %arg1: i32) -> (i32, i32) {
    %c0_i32 = arith.constant 0 : i32
    %c0_i32_0 = arith.constant 0 : i32
    %c0_i32_1 = arith.constant 0 : i32
    return %c0_i32, %c0_i32_0 : i32, i32
  }
  func.func @transform_8(%arg0: i32, %arg1: i32) -> (i32, i32) {
    %c2_i32 = arith.constant 2 : i32
    %0 = arith.muli %arg0, %c2_i32 : i32
    %1 = arith.addi %0, %arg1 : i32
    %c0_i32 = arith.constant 0 : i32
    %c0_i32_0 = arith.constant 0 : i32
    return %1, %c0_i32 : i32, i32
  }
}

</mosaic_0001>

<bundles_post_ra>
// kernel: _lambda_.1
= control target key start
LH: loop header
LB: loop body
LE: loop exit
PB: predicated region body
PF: predicated region fallthrough
CT: control target
= control target key end

     0   :  { %s5188_s27 = smov 0   ;;  %s5190_s28 = smov 0   ;;  %s6410_s0 = inlined_call_operand.vmem [shape: bf16[512,16], index: 0, kind: input, shape index: {}, may-alias: {0,1,2}]   ;;  %s6411_s1 = inlined_call_operand.vmem [shape: bf16[512,16], index: 1, kind: input, shape index: {}, may-alias: {0,1,2}]   ;;  %s6412_s2 = inlined_call_operand.vmem [shape: bf16[512,16], index: 2, kind: input, shape index: {}, may-alias: {0,1,2}]   ;;  %s6413_s3 = inlined_call_operand.vmem [shape: bf16[16,4], index: 3, kind: input, shape index: {}]   ;;  %s6414_s4 = inlined_call_operand.vmem [shape: bf16[9,4,4], index: 4, kind: input, shape index: {}]   ;;  %s6415_s5 = inlined_call_operand.vmem [shape: bf16[4,16], index: 5, kind: input, shape index: {}]   ;;  %s6416_s6 = inlined_call_operand.vmem [shape: f32[4,4], index: 6, kind: input, shape index: {}]   ;;  %s6417_s7 = inlined_call_operand.vmem [shape: f32[2,16], index: 7, kind: input, shape index: {}]   ;;  %s6418_s8 = inlined_call_operand.vmem [shape: bf16[512,16], index: 8, kind: output, shape index: {}]  }
   0x1   :  { %s5192_s29 = smov 0   ;;  %s5194_s30 = smov 0  }
   0x2   :  { %s5196_s9 = smov 0  }
   0x3 LB: > { %s27_s10 = sadd.s32 1, %s5127_s29  ;;  %s30_s11 = sadd.s32 1, %s5131_s30  ;;  %s5135_s9 = sphi %s5196_s9, %s18_s9   ;;  %s5131_s30 = sphi %s5194_s30, %s6448_s30   ;;  %s5127_s29 = sphi %s5192_s29, %s6447_s29   ;;  %s5123_s28 = sphi %s5190_s28, %s6446_s28   ;;  %s5119_s27 = sphi %s5188_s27, %s6445_s27  }
   0x4   : > { %p28_p0 = scmp.ge.s32.totalorder %s27_s10, 2  ;;  %p4213_p1 = scmp.ge.s32.totalorder %s5135_s9, 1 }
   0x5   : > { %p357_p2 = scmp.lt.s32.totalorder %s5135_s9, 5 }
   0x6   : > { %s6450_s10 = smov (%p28_p0, %s27_s10), 0  ;;  %s6452_s11 = smov (!%p28_p0, %s30_s11), %s5131_s30 }
   0x7   : > { %p358_p3 = pnand %p4213_p1, %p357_p2  ;;  %p32_p4 = scmp.ge.s32.totalorder %s6452_s11, 2 }
   0x9   : > { %s6454_s11 = smov (%p32_p4, %s6452_s11), 0  ;;  %361 = sbr.rel (%p358_p3) target bundleno = 1432 (0x598), region = 52 }
  0x10   : > { %s4218_s12 = sshll.u32 %s5119_s27, 3  ;;  %v5226_v0 = vld [vmem:[%s6413_s3] sm:$0xff]   ;;  %vm478_vm0 = vcmask 24576   ;;  %s4217_s17 = sshll.u32 %s5123_s28, 4  ;;  %vm479_vm1 = vsmask.f32 256 }
  0x11   : > { %s4219_s13 = sadd.s32 4294967295, %s4218_s12  ;;  %s4487_s14 = sadd.s32 8, %s4218_s12  ;;  %4666 = vmatprep.subr.bf16.mxu0 %v5226_v0  ;;  %4876 = vmatprep.subr.bf16.mxu1 %v5226_v0  ;;  %v481_v1 = vld [vmem:[#allocation2] sm:$0x1]  ;;  %vm5236_vm2 = vmand %vm478_vm0, %vm479_vm1  ;;  %v487_v3 = vld [vmem:[#allocation2 + $0x18] sm:$0x1] }
  0x12   : > { %p430_p5 = scmp.gt.s32.totalorder %s4219_s13, 0  ;;  %p448_p6 = scmp.lt.s32.totalorder %s4487_s14, 15  ;;  %4667 = vmatpush3.bf16.msra.mxu0 %v5226_v0  ;;  %4877 = vmatpush3.bf16.msra.mxu1 %v5226_v0  ;;  %v508_v4 = vld [vmem:[#allocation2 + $0x6c] sm:$0x1]  ;;  %v482_v5 = vsel %vm5236_vm2, 0, %v481_v1  ;;  %v488_v6 = vsel %vm5236_vm2, 0, %v487_v3 }
  0x13   : > { %s4214_s18 = sshll.u32 %s5123_s28, 1  ;;  %v509_v7 = vsel %vm5236_vm2, 0, %v508_v4  ;;  %vm511_vm3 = vsmask.f32 7938  ;;  %483 = vst [vmem:[#allocation2] sm:$0x1] %v482_v5 }
  0x14   : > { %s6456_s13 = smov (!%p430_p5, %s4219_s13), 0  ;;  %s6458_s14 = smov (!%p448_p6, %s4487_s14), 15  ;;  %489 = vst [vmem:[#allocation2 + $0x18] sm:$0x1] %v488_v6  ;;  %510 = vst [vmem:[#allocation2 + $0x6c] sm:$0x1] %v509_v7 }
  0x15   : > { %s432_s19 = sadd.s32 %s4217_s17, %s6456_s13  ;;  %s418_s20 = sadd.s32 %s5119_s27, %s4214_s18  ;;  %vm5250_vm4 = vmand %vm478_vm0, %vm511_vm3  ;;  %v513_v9 = vld [vmem:[#allocation2 + $0x8] sm:$0x1]  ;;  %v540_v10 = vld [vmem:[#allocation2 + $0x74] sm:$0x1]  ;;  %vm605_vm5 = vcmask 130048   ;;  %vm994_vm6 = vcmask 27648  }
  0x16   : > { %s4220_s21 = sshll.u32 %s432_s19, 1  ;;  %s450_s22 = sadd.s32 %s4217_s17, %s6458_s14  ;;  %v514_v11 = vsel %vm5250_vm4, 0, %v513_v9  ;;  %v541_v12 = vsel %vm5250_vm4, 0, %v540_v10  ;;  %v499_v21 = vld [vmem:[#allocation2 + $0x48] sm:$0x1]  ;;  %vm5363_vm8 = vmand %vm994_vm6, %vm511_vm3 }
  0x17   : > { %p434_p7 = scmp.lt.s32.totalorder %s4220_s21, 63  ;;  %s4224_s23 = sshll.u32 %s450_s22, 1  ;;  %515 = vst [vmem:[#allocation2 + $0x8] sm:$0x1] %v514_v11  ;;  %542 = vst [vmem:[#allocation2 + $0x74] sm:$0x1] %v541_v12 }
  0x18   : > { %p452_p8 = scmp.lt.s32.totalorder %s4224_s23, 63  ;;  %s4215_s24 = sshll.u32 %s418_s20, 4  ;;  %v500_v22 = vsel %vm5236_vm2, 0, %v499_v21  ;;  %v484_v23 = vld [vmem:[#allocation2 + $0xc] sm:$0x1] }
  0x19   : > { %s6460_s21 = smov (!%p434_p7, %s4220_s21), 63  ;;  %p420_p9 = scmp.lt.s32.totalorder %s4215_s24, 63  ;;  %v496_v24 = vld [vmem:[#allocation2 + $0x3c] sm:$0x1]  ;;  %501 = vst [vmem:[#allocation2 + $0x48] sm:$0x1] %v500_v22 }
  0x1a   : > { %s6462_s23 = smov (!%p452_p8, %s4224_s23), 63  ;;  %s4221_s25 = sshll.u32 %s6460_s21, 2  ;;  %v485_v25 = vsel %vm5236_vm2, 0, %v484_v23  ;;  %v497_v26 = vsel %vm5236_vm2, 0, %v496_v24  ;;  %v519_v27 = vld [vmem:[#allocation2 + $0x20] sm:$0x1] }
  0x1b   : > { %s5261_s12 = scalar_lea.vmem %s6411_s1, %s4221_s25  ;;  %s4225_s13 = sshll.u32 %s6462_s23, 2  ;;  %v531_v28 = vld [vmem:[#allocation2 + $0x50] sm:$0x1]  ;;  %486 = vst [vmem:[#allocation2 + $0xc] sm:$0x1] %v485_v25  ;;  %v520_v29 = vsel %vm5250_vm4, 0, %v519_v27 }
  0x1c   : > { %s5266_s16 = scalar_lea.vmem %s6412_s2, %s4225_s13  ;;  %s6464_s24 = smov (!%p420_p9, %s4215_s24), 63  ;;  %498 = vst [vmem:[#allocation2 + $0x3c] sm:$0x1] %v497_v26  ;;  %v532_v30 = vsel %vm5250_vm4, 0, %v531_v28  ;;  %521 = vst [vmem:[#allocation2 + $0x20] sm:$0x1] %v520_v29 }
  0x1d   : > { %s4216_s17 = sshll.u32 %s6464_s24, 2  ;;  %533 = vst [vmem:[#allocation2 + $0x50] sm:$0x1] %v532_v30  ;;  %v516_v31 = vld [vmem:[#allocation2 + $0x14] sm:$0x1]  ;;  %p4264_p10 = scmp.ne.s32.totalorder %s5119_s27, 0 }
  0x1e   : > { %s5271_s20 = scalar_lea.vmem %s6410_s0, %s4216_s17  ;;  %s5276_s23 = scalar_lea.vmem %s6418_s8, %s4216_s17  ;;  %v517_v32 = vsel %vm5250_vm4, 0, %v516_v31  ;;  %v528_v33 = vld [vmem:[#allocation2 + $0x44] sm:$0x1]  ;;  %v493_v35 = vld [vmem:[#allocation2 + $0x30] sm:$0x1] }
  0x1f   : > { %v5063_v13 = vld [vmem:[%s5271_s20] sm:$0xff]   ;;  %v5065_v15 = vld [vmem:[%s5271_s20 + $0x8] sm:$0xff]   ;;  %v5067_v17 = vld [vmem:[%s5271_s20 + $0x10] sm:$0xff]   ;;  %518 = vst [vmem:[#allocation2 + $0x14] sm:$0x1] %v517_v32  ;;  %v529_v34 = vsel %vm5250_vm4, 0, %v528_v33 }
  0x20   : > { %v5064_v14 = vld [vmem:[%s5271_s20 + $0x20] sm:$0xff]   ;;  %4668 = vmatprep.mubr.msk.bf16.mxu0 %vm605_vm5, %v5063_v13  ;;  %v5066_v16 = vld [vmem:[%s5271_s20 + $0x28] sm:$0xff]   ;;  %v5068_v18 = vld [vmem:[%s5271_s20 + $0x30] sm:$0xff]   ;;  %530 = vst [vmem:[#allocation2 + $0x44] sm:$0x1] %v529_v34  ;;  %v494_v37 = vsel %vm5236_vm2, 0, %v493_v35 }
  0x21   : > { %4676 = vmatprep.mubr.msk.bf16.mxu1 %vm605_vm5, %v5064_v14  ;;  %4669 = vmatmul.mubr.msk.bf16.vlgmr.msra.gmra.mrb[0].mxu0 %vm605_vm5, %v5065_v15  ;;  %v5069_v19 = vld [vmem:[%s5271_s20 + $0x18] sm:$0xff]   ;;  %v505_v36 = vld [vmem:[#allocation2 + $0x60] sm:$0x1]  ;;  %v490_v39 = vld [vmem:[#allocation2 + $0x24] sm:$0x1] }
  0x22   : > { %4677 = vmatmul.mubr.msk.bf16.vlgmr.msra.gmra.mrb[0].mxu1 %vm605_vm5, %v5066_v16  ;;  %4672 = vmatprep.mubr.msk.bf16.mxu0 %vm605_vm5, %v5067_v17  ;;  %v5070_v20 = vld [vmem:[%s5271_s20 + $0x38] sm:$0xff]   ;;  %v506_v38 = vsel %vm5236_vm2, 0, %v505_v36  ;;  %495 = vst [vmem:[#allocation2 + $0x30] sm:$0x1] %v494_v37  ;;  %v491_v40 = vsel %vm5236_vm2, 0, %v490_v39 }
  0x23   : > { %4680 = vmatprep.mubr.msk.bf16.mxu1 %vm605_vm5, %v5068_v18  ;;  %507 = vst [vmem:[#allocation2 + $0x60] sm:$0x1] %v506_v38  ;;  %v502_v41 = vld [vmem:[#allocation2 + $0x54] sm:$0x1]  ;;  %492 = vst [vmem:[#allocation2 + $0x24] sm:$0x1] %v491_v40 }
  0x24   : > { %v503_v42 = vsel %vm5236_vm2, 0, %v502_v41  ;;  %v525_v43 = vld [vmem:[#allocation2 + $0x38] sm:$0x1]  ;;  %v537_v45 = vld [vmem:[#allocation2 + $0x68] sm:$0x1] }
  0x25   : > { %504 = vst [vmem:[#allocation2 + $0x54] sm:$0x1] %v503_v42  ;;  %v526_v44 = vsel %vm5250_vm4, 0, %v525_v43  ;;  %v538_v46 = vsel %vm5250_vm4, 0, %v537_v45  ;;  %v522_v47 = vld [vmem:[#allocation2 + $0x2c] sm:$0x1] }
  0x26   : > { %527 = vst [vmem:[#allocation2 + $0x38] sm:$0x1] %v526_v44  ;;  %539 = vst [vmem:[#allocation2 + $0x68] sm:$0x1] %v538_v46  ;;  %v534_v48 = vld [vmem:[#allocation2 + $0x5c] sm:$0x1] }
  0x27   : > { %v523_v49 = vsel %vm5250_vm4, 0, %v522_v47  ;;  %v535_v50 = vsel %vm5250_vm4, 0, %v534_v48  ;;  %v5327_v51 = vld [vmem:[%s6416_s6] ss:$0 sm:$0xff]  ;;  %v5332_v52 = vld [vmem:[%s6416_s6 + $0x1] ss:$0 sm:$0xff] }
  0x28   : > { %524 = vst [vmem:[#allocation2 + $0x2c] sm:$0x1] %v523_v49  ;;  %536 = vst [vmem:[#allocation2 + $0x5c] sm:$0x1] %v535_v50  ;;  %vm831_vm7 = vsmask.f32 4368 }
  0x29   : > { %4673 = vmatmul.mubr.msk.bf16.gmra.mrb[4].mxu0 %vm605_vm5, %v5069_v19  ;;  %v1004_v32 = vld [vmem:[#allocation2 + $0x18] sm:$0xf]  ;;  %v1032_v47 = vld [vmem:[#allocation2 + $0x48] sm:$0xf]  ;;  %vm5377_vm9 = vmor %vm479_vm1, %vm831_vm7 }
  0x2a   : > { %4681 = vmatmul.mubr.msk.bf16.gmra.mrb[4].mxu1 %vm605_vm5, %v5070_v20 }
  0xf4   : > { %v4670_v53 = vpop.f32.mrb[0].mxu0 }
  0xf5   : > { %v733_v54 = vmul.f32 %v4670_v53, %v5327_v51  ;;  %v4678_v55 = vpop.f32.mrb[0].mxu1  ;;  %v664_v56 = vpop.f32.mrb[1].mxu0 }
  0xf6   : > { %v741_v57 = vmul.f32 %v4678_v55, %v5327_v51  ;;  %v731_v58 = vmul.f32 %v5327_v51, %v664_v56  ;;  %v696_v59 = vpop.f32.mrb[1].mxu1  ;;  %v4671_v60 = vpop.f32.mrb[2].mxu0  ;;  %v996_v56 = vld [vmem:[#allocation2 + $0xc] sm:$0xf] }
  0xf7   : > { %v753_v61 = vadd.f32 %v5332_v52, %v733_v54  ;;  %v739_v62 = vmul.f32 %v5327_v51, %v696_v59  ;;  %v734_v63 = vmul.f32 %v4671_v60, %v5327_v51  ;;  %v4679_v1 = vpop.f32.mrb[2].mxu1  ;;  %v667_v3 = vpop.f32.mrb[3].mxu0 }
  0xf8   : > { %v761_v4 = vadd.f32 %v5332_v52, %v741_v57  ;;  %v751_v5 = vadd.f32 %v5332_v52, %v731_v58  ;;  %v742_v6 = vmul.f32 %v4679_v1, %v5327_v51  ;;  %v732_v7 = vmul.f32 %v5327_v51, %v667_v3  ;;  %v699_v8 = vpop.f32.mrb[3].mxu1 }
  0xf9   : > { %v769_v9 = vmax.f32 %v753_v61, 0.0  ;;  %v759_v10 = vadd.f32 %v5332_v52, %v739_v62  ;;  %v754_v11 = vadd.f32 %v5332_v52, %v734_v63  ;;  %v740_v12 = vmul.f32 %v5327_v51, %v699_v8  ;;  %v1025_v63 = vld [vmem:[#allocation2 + $0x3c] sm:$0xf] }
  0xfa   : > { %v777_v13 = vmax.f32 %v761_v4, 0.0  ;;  %v767_v14 = vmax.f32 %v751_v5, 0.0  ;;  %v762_v15 = vadd.f32 %v5332_v52, %v742_v6  ;;  %v5349_v16 = vadd.f32 %v5332_v52, %v732_v7  ;;  %v1008_v7 = vld [vmem:[#allocation2 + $0x20] sm:$0x1] }
  0xfb   : > { %v4490_v17 = vpack.c.bf16 %v769_v9, %v769_v9  ;;  %v775_v18 = vmax.f32 %v759_v10, 0.0  ;;  %v770_v19 = vmax.f32 %v754_v11, 0.0  ;;  %v5352_v20 = vadd.f32 %v5332_v52, %v740_v12 }
  0xfc   : > { %v4498_v21 = vpack.c.bf16 %v777_v13, %v777_v13  ;;  %v4488_v22 = vpack.c.bf16 %v767_v14, %v767_v14  ;;  %v778_v23 = vmax.f32 %v762_v15, 0.0  ;;  %v768_v24 = vmax.f32 %v5349_v16, 0.0  ;;  %v4674_v25 = vpop.f32.mrb[4].mxu0 }
  0xfd   : > { %v851_v26 = vshrl.u32 %v4490_v17, 16  ;;  %v854_v27 = vshll.u32 %v4490_v17, 16  ;;  %v4496_v28 = vpack.c.bf16 %v775_v18, %v775_v18  ;;  %v4491_v29 = vpack.c.bf16 %v770_v19, %v770_v19  ;;  %v4682_v30 = vpop.f32.mrb[4].mxu1  ;;  %v680_v31 = vpop.f32.mrb[5].mxu0 }
  0xfe   : > { %v919_v33 = vshrl.u32 %v4498_v21, 16  ;;  %v922_v34 = vshll.u32 %v4498_v21, 16  ;;  %v834_v35 = vshrl.u32 %v4488_v22, 16  ;;  %v837_v36 = vshll.u32 %v4488_v22, 16  ;;  %v712_v37 = vpop.f32.mrb[5].mxu1  ;;  %v5355_v38 = vpop.f32.mrb[6].mxu0 }
  0xff   : > { %v853_v39 = vrot.slane %v851_v26, 7  ;;  %v902_v40 = vshrl.u32 %v4496_v28, 16  ;;  %v905_v41 = vshll.u32 %v4496_v28, 16  ;;  %v859_v42 = vshrl.u32 %v4491_v29, 16  ;;  %v5357_v43 = vpop.f32.mrb[6].mxu1  ;;  %v5359_v44 = vpop.f32.mrb[7].mxu0 }
 0x100   : > { %v921_v46 = vrot.slane %v919_v33, 7  ;;  %v5367_v48 = vrot.slane %v834_v35, 7  ;;  %v862_v49 = vshll.u32 %v4491_v29, 16  ;;  %v4499_v50 = vpack.c.bf16 %v778_v23, %v778_v23  ;;  %v5369_v53 = vpop.f32.mrb[7].mxu1  ;;  %v1036_v21 = vld [vmem:[#allocation2 + $0x50] sm:$0x1] }
 0x101   : > { %v856_v54 = vor.u32 %v854_v27, %v853_v39  ;;  %v857_v55 = vrot.slane %v853_v39, 4  ;;  %v5371_v57 = vrot.slane %v902_v40, 7  ;;  %v861_v58 = vrot.slane %v859_v42, 7 }
 0x102   : > { %v924_v59 = vor.u32 %v922_v34, %v921_v46  ;;  %v925_v60 = vrot.slane %v921_v46, 4  ;;  %v839_v61 = vor.u32 %v837_v36, %v5367_v48  ;;  %v840_v62 = vrot.slane %v5367_v48, 4  ;;  %v1001_v36 = vld [vmem:[#allocation2 + $0x14] sm:$0x1] }
 0x103   : > { %v1005_v3 = vsel %vm5363_vm8, %v856_v54, %v1004_v32  ;;  %v907_v4 = vor.u32 %v905_v41, %v5371_v57  ;;  %v908_v5 = vrot.slane %v5371_v57, 4  ;;  %v864_v6 = vor.u32 %v862_v49, %v861_v58 }
 0x104   : > { %1006 = vst [vmem:[#allocation2 + $0x18] sm:$0xf] %v1005_v3  ;;  %v1033_v8 = vsel %vm5363_vm8, %v924_v59, %v1032_v47  ;;  %v997_v9 = vsel %vm5363_vm8, %v839_v61, %v996_v56  ;;  %v866_v10 = vrot.slane %v861_v58, 4  ;;  %v927_v11 = vshrl.u32 %v4499_v50, 16 }
 0x105   : > { %1034 = vst [vmem:[#allocation2 + $0x48] sm:$0xf] %v1033_v8  ;;  %998 = vst [vmem:[#allocation2 + $0xc] sm:$0xf] %v997_v9  ;;  %v1026_v12 = vsel %vm5363_vm8, %v907_v4, %v1025_v63  ;;  %v865_v13 = vsel %vm5377_vm9, %v857_v55, %v864_v6  ;;  %v930_v14 = vshll.u32 %v4499_v50, 16  ;;  %v4489_v15 = vpack.c.bf16 %v768_v24, %v768_v24 }
 0x106   : > { %1027 = vst [vmem:[#allocation2 + $0x3c] sm:$0xf] %v1026_v12  ;;  %1007 = vst.msk [vmem:[#allocation2 + $0x1c] sm:$0xf] %vm994_vm6, %v865_v13  ;;  %v1009_v16 = vsel %vm5236_vm2, %v866_v10, %v1008_v7  ;;  %v929_v17 = vrot.slane %v927_v11, 7  ;;  %v776_v18 = vmax.f32 %v5352_v20, 0.0  ;;  %v737_v19 = vmul.f32 %v4674_v25, %v5327_v51 }
 0x107   : > { %1010 = vst [vmem:[#allocation2 + $0x20] sm:$0x1] %v1009_v16  ;;  %v842_v22 = vshrl.u32 %v4489_v15, 16  ;;  %v845_v23 = vshll.u32 %v4489_v15, 16  ;;  %v745_v26 = vmul.f32 %v4682_v30, %v5327_v51  ;;  %v735_v27 = vmul.f32 %v5327_v51, %v680_v31  ;;  %v1029_v55 = vld [vmem:[#allocation2 + $0x44] sm:$0x1] }
 0x108   : > { %v932_v24 = vor.u32 %v930_v14, %v929_v17  ;;  %v934_v28 = vrot.slane %v929_v17, 4  ;;  %v4497_v29 = vpack.c.bf16 %v776_v18, %v776_v18  ;;  %v757_v32 = vadd.f32 %v5332_v52, %v737_v19  ;;  %v1018_v14 = vld [vmem:[#allocation2 + $0x30] sm:$0xf]  ;;  %v1046_v15 = vld [vmem:[#allocation2 + $0x60] sm:$0xf] }
 0x109   : > { %v844_v33 = vrot.slane %v842_v22, 7  ;;  %v765_v34 = vadd.f32 %v5332_v52, %v745_v26  ;;  %v755_v20 = vadd.f32 %v5332_v52, %v735_v27  ;;  %v743_v25 = vmul.f32 %v5327_v51, %v712_v37 }
 0x10a   : > { %v933_v35 = vsel %vm5377_vm9, %v925_v60, %v932_v24  ;;  %v1037_v30 = vsel %vm5236_vm2, %v934_v28, %v1036_v21  ;;  %v910_v31 = vshrl.u32 %v4497_v29, 16  ;;  %v913_v39 = vshll.u32 %v4497_v29, 16  ;;  %v1011_v21 = vld [vmem:[#allocation2 + $0x24] sm:$0xf] }
 0x10b   : > { %1035 = vst.msk [vmem:[#allocation2 + $0x4c] sm:$0xf] %vm994_vm6, %v933_v35  ;;  %1038 = vst [vmem:[#allocation2 + $0x50] sm:$0x1] %v1037_v30  ;;  %v847_v40 = vor.u32 %v845_v23, %v844_v33  ;;  %v849_v41 = vrot.slane %v844_v33, 4  ;;  %v773_v42 = vmax.f32 %v757_v32, 0.0  ;;  %v763_v37 = vadd.f32 %v5332_v52, %v743_v25 }
 0x10c   : > { %v781_v46 = vmax.f32 %v765_v34, 0.0  ;;  %v912_v47 = vrot.slane %v910_v31, 7  ;;  %v771_v48 = vmax.f32 %v755_v20, 0.0  ;;  %v738_v49 = vmul.f32 %v5355_v38, %v5327_v51  ;;  %v1039_v33 = vld [vmem:[#allocation2 + $0x54] sm:$0xf] }
 0x10d   : > { %v848_v50 = vsel %vm5377_vm9, %v840_v62, %v847_v40  ;;  %v1002_v54 = vsel %vm5236_vm2, %v849_v41, %v1001_v36  ;;  %v4494_v56 = vpack.c.bf16 %v773_v42, %v773_v42  ;;  %v779_v63 = vmax.f32 %v763_v37, 0.0 }
 0x10e   : > { %v4502_v58 = vpack.c.bf16 %v781_v46, %v781_v46  ;;  %1000 = vst.msk [vmem:[#allocation2 + $0x10] sm:$0xf] %vm994_vm6, %v848_v50  ;;  %1003 = vst [vmem:[#allocation2 + $0x14] sm:$0x1] %v1002_v54  ;;  %v915_v59 = vor.u32 %v913_v39, %v912_v47  ;;  %v917_v60 = vrot.slane %v912_v47, 4  ;;  %v4492_v61 = vpack.c.bf16 %v771_v48, %v771_v48 }
 0x10f   : > { %v885_v3 = vshrl.u32 %v4494_v56, 16  ;;  %v888_v4 = vshll.u32 %v4494_v56, 16  ;;  %v4500_v12 = vpack.c.bf16 %v779_v63, %v779_v63  ;;  %v758_v13 = vadd.f32 %v5332_v52, %v738_v49  ;;  %v1022_v54 = vld [vmem:[#allocation2 + $0x38] sm:$0x1]  ;;  %v1050_v63 = vld [vmem:[#allocation2 + $0x68] sm:$0x1] }
 0x110   : > { %v953_v6 = vshrl.u32 %v4502_v58, 16  ;;  %v956_v38 = vshll.u32 %v4502_v58, 16  ;;  %v916_v62 = vsel %vm5377_vm9, %v908_v5, %v915_v59  ;;  %v1030_v7 = vsel %vm5236_vm2, %v917_v60, %v1029_v55 }
 0x111   : > { %v868_v8 = vshrl.u32 %v4492_v61, 16  ;;  %v871_v9 = vshll.u32 %v4492_v61, 16  ;;  %1028 = vst.msk [vmem:[#allocation2 + $0x40] sm:$0xf] %vm994_vm6, %v916_v62  ;;  %1031 = vst [vmem:[#allocation2 + $0x44] sm:$0x1] %v1030_v7  ;;  %v746_v5 = vmul.f32 %v5357_v43, %v5327_v51  ;;  %v736_v16 = vmul.f32 %v5327_v51, %v5359_v44 }
 0x112   : > { %v887_v10 = vrot.slane %v885_v3, 7  ;;  %v5424_v11 = vrot.slane %v953_v6, 7  ;;  %v744_v17 = vmul.f32 %v5327_v51, %v5369_v53  ;;  %v936_v23 = vshrl.u32 %v4500_v12, 16 }
 0x113   : > { %v5427_v57 = vrot.slane %v868_v8, 7  ;;  %v939_v26 = vshll.u32 %v4500_v12, 16  ;;  %v774_v24 = vmax.f32 %v758_v13, 0.0  ;;  %v766_v44 = vadd.f32 %v5332_v52, %v746_v5 }
 0x114   : > { %v890_v18 = vor.u32 %v888_v4, %v887_v10  ;;  %v958_v19 = vor.u32 %v956_v38, %v5424_v11  ;;  %v938_v28 = vrot.slane %v936_v23, 7  ;;  %v756_v29 = vadd.f32 %v5332_v52, %v736_v16 }
 0x115   : > { %v873_v22 = vor.u32 %v871_v9, %v5427_v57  ;;  %v764_v32 = vadd.f32 %v5332_v52, %v744_v17  ;;  %v4495_v34 = vpack.c.bf16 %v774_v24, %v774_v24  ;;  %v782_v20 = vmax.f32 %v766_v44, 0.0 }
 0x116   : > { %v1019_v27 = vsel %vm5363_vm8, %v890_v18, %v1018_v14  ;;  %v1047_v43 = vsel %vm5363_vm8, %v958_v19, %v1046_v15  ;;  %v941_v25 = vor.u32 %v939_v26, %v938_v28  ;;  %v772_v35 = vmax.f32 %v756_v29, 0.0 }
 0x117   : > { %1020 = vst [vmem:[#allocation2 + $0x30] sm:$0xf] %v1019_v27  ;;  %1048 = vst [vmem:[#allocation2 + $0x60] sm:$0xf] %v1047_v43  ;;  %v1012_v53 = vsel %vm5363_vm8, %v873_v22, %v1011_v21  ;;  %v780_v30 = vmax.f32 %v764_v32, 0.0  ;;  %v893_v36 = vshrl.u32 %v4495_v34, 16  ;;  %v4503_v31 = vpack.c.bf16 %v782_v20, %v782_v20 }
 0x118   : > { %1013 = vst [vmem:[#allocation2 + $0x24] sm:$0xf] %v1012_v53  ;;  %v891_v39 = vrot.slane %v887_v10, 4  ;;  %v1040_v40 = vsel %vm5363_vm8, %v941_v25, %v1039_v33  ;;  %v4493_v41 = vpack.c.bf16 %v772_v35, %v772_v35  ;;  %v959_v46 = vrot.slane %v5424_v11, 4  ;;  %v1015_v10 = vld [vmem:[#allocation2 + $0x2c] sm:$0x1] }
 0x119   : > { %v4501_v42 = vpack.c.bf16 %v780_v30, %v780_v30  ;;  %1041 = vst [vmem:[#allocation2 + $0x54] sm:$0xf] %v1040_v40  ;;  %v895_v47 = vrot.slane %v893_v36, 7  ;;  %v896_v48 = vshll.u32 %v4495_v34, 16  ;;  %v961_v37 = vshrl.u32 %v4503_v31, 16 }
 0x11a   : > { %v874_v49 = vrot.slane %v5427_v57, 4  ;;  %v942_v50 = vrot.slane %v938_v28, 4  ;;  %v876_v55 = vshrl.u32 %v4493_v41, 16  ;;  %v964_v61 = vshll.u32 %v4503_v31, 16  ;;  %v1043_v11 = vld [vmem:[#allocation2 + $0x5c] sm:$0x1] }
 0x11b   : > { %v944_v56 = vshrl.u32 %v4501_v42, 16  ;;  %v898_v58 = vor.u32 %v896_v48, %v895_v47  ;;  %v900_v59 = vrot.slane %v895_v47, 4  ;;  %v963_v60 = vrot.slane %v961_v37, 7  ;;  %v1057_v21 = vld [vmem:[#allocation2] sm:$0xf] (!%p4264_p10) }
 0x11c   : > { %v878_v3 = vrot.slane %v876_v55, 7  ;;  %v879_v4 = vshll.u32 %v4493_v41, 16  ;;  %v947_v38 = vshll.u32 %v4501_v42, 16  ;;  %v1061_v22 = vld [vmem:[#allocation2 + $0x8] sm:$0x1] (!%p4264_p10)  ;;  %v1058_v23 = vsel (!%p4264_p10), %vm5363_vm8, 0, %v1057_v21 }
 0x11d   : > { %v946_v6 = vrot.slane %v944_v56, 7  ;;  %v899_v62 = vsel %vm5377_vm9, %v891_v39, %v898_v58  ;;  %v1023_v7 = vsel %vm5236_vm2, %v900_v59, %v1022_v54  ;;  %v966_v8 = vor.u32 %v964_v61, %v963_v60  ;;  %1056 = sbr.rel (%p4264_p10) target bundleno = 292 (0x124), region = 56  ;;  %1059 = vst [vmem:[#allocation2] sm:$0xf] (!%p4264_p10), %v1058_v23 }
 0x11e   : > { %v968_v9 = vrot.slane %v963_v60, 4  ;;  %1021 = vst.msk [vmem:[#allocation2 + $0x34] sm:$0xf] %vm994_vm6, %v899_v62  ;;  %1024 = vst [vmem:[#allocation2 + $0x38] sm:$0x1] %v1023_v7  ;;  %v881_v12 = vor.u32 %v879_v4, %v878_v3  ;;  %v883_v13 = vrot.slane %v878_v3, 4 }
 0x11f   : > { %v949_v14 = vor.u32 %v947_v38, %v946_v6  ;;  %v951_v15 = vrot.slane %v946_v6, 4  ;;  %v967_v57 = vsel %vm5377_vm9, %v959_v46, %v966_v8  ;;  %v5137_v26 = vmov (!%p4264_p10), 0  }
 0x120   : > { %v1051_v5 = vsel %vm5236_vm2, %v968_v9, %v1050_v63  ;;  %1049 = vst.msk [vmem:[#allocation2 + $0x64] sm:$0xf] %vm994_vm6, %v967_v57  ;;  %v882_v16 = vsel %vm5377_vm9, %v874_v49, %v881_v12  ;;  %v1016_v17 = vsel %vm5236_vm2, %v883_v13, %v1015_v10  ;;  %1060 = vst.msk [vmem:[#allocation2 + $0x4] sm:$0xf] (!%p4264_p10), %vm994_vm6, %v5137_v26  ;;  %v1062_v27 = vsel (!%p4264_p10), %vm5236_vm2, 0, %v1061_v22 }
 0x121   : > { %1052 = vst [vmem:[#allocation2 + $0x68] sm:$0x1] %v1051_v5  ;;  %v950_v18 = vsel %vm5377_vm9, %v942_v50, %v949_v14  ;;  %v1044_v19 = vsel %vm5236_vm2, %v951_v15, %v1043_v11  ;;  %1014 = vst.msk [vmem:[#allocation2 + $0x28] sm:$0xf] %vm994_vm6, %v882_v16 }
 0x122   : > { %1017 = vst [vmem:[#allocation2 + $0x2c] sm:$0x1] %v1016_v17  ;;  %1042 = vst.msk [vmem:[#allocation2 + $0x58] sm:$0xf] %vm994_vm6, %v950_v18 }
 0x123   : > { %1045 = vst [vmem:[#allocation2 + $0x5c] sm:$0x1] %v1044_v19  ;;  %1063 = vst [vmem:[#allocation2 + $0x8] sm:$0x1] (!%p4264_p10), %v1062_v27 }
 0x124 PF: > { %p4265_p11 = scmp.le.s32.totalorder %s5119_s27, 0 }
 0x125   : > { %v5138_v43 = vmov (!%p4265_p11), 0.0   ;;  %vm5139_vm10 = vmmov (!%p4265_p11), 0   ;;  %v5071_v24 = vld [vmem:[%s5261_s12] sm:$0xff] (!%p4265_p11)  }
 0x126   : > { %1067 = sbr.rel (%p4265_p11) target bundleno = 528 (0x210), region = 60  ;;  %4684 = vmatprep.subr.bf16.mxu0 (!%p4265_p11), %v5138_v43  ;;  %4686 = vmatprep.mubr.msk.bf16.mxu0 (!%p4265_p11), %vm5139_vm10, %v5138_v43  ;;  %v1151_v42 = vld [vmem:[#allocation2] sm:$0xf] (!%p4265_p11) }
 0x127   : > { %4685 = vmatpush3.bf16.msra.mxu0 (!%p4265_p11), %v5226_v0 }
 0x12a   : > { %4687 = vmatmul.mubr.msk.bf16.vlgmr.msra.gmra.mrb[0].mxu0 (!%p4265_p11), %vm605_vm5, %v5071_v24  ;;  %v1155_v37 = vld [vmem:[#allocation2 + $0x8] sm:$0x1] (!%p4265_p11) }
 0x1fd   : > { %v1112_v44 = vpop.f32.mrb[0].mxu0 }
 0x1fe   : > { %v1119_v53 = vmul.f32 %v5327_v51, %v1112_v44  ;;  %v4688_v28 = vpop.f32.mrb[1].mxu0 }
 0x1ff   : > { %v1115_v29 = vpop.f32.mrb[2].mxu0 }
 0x200   : > { %v1121_v32 = vadd.f32 %v5332_v52, %v1119_v53  ;;  %v1120_v33 = vmul.f32 %v5327_v51, %v1115_v29  ;;  %v4689_v34 = vpop.f32.mrb[3].mxu0 }
 0x202   : > { %v1123_v20 = vmax.f32 %v1121_v32, 0.0  ;;  %v1122_v25 = vadd.f32 %v5332_v52, %v1120_v33 }
 0x204   : > { %v4504_v35 = vpack.c.bf16 %v1123_v20, %v1123_v20  ;;  %v1124_v30 = vmax.f32 %v1122_v25, 0.0 }
 0x206   : > { %v1132_v36 = vshrl.u32 %v4504_v35, 16  ;;  %v4505_v31 = vpack.c.bf16 %v1124_v30, %v1124_v30  ;;  %v1135_v40 = vshll.u32 %v4504_v35, 16 }
 0x208   : > { %v1134_v39 = vrot.slane %v1132_v36, 7  ;;  %v1140_v41 = vshrl.u32 %v4505_v31, 16  ;;  %v1143_v48 = vshll.u32 %v4505_v31, 16 }
 0x20a   : > { %v1137_v46 = vor.u32 %v1135_v40, %v1134_v39  ;;  %v1142_v47 = vrot.slane %v1140_v41, 7  ;;  %v1138_v49 = vrot.slane %v1134_v39, 4 }
 0x20c   : > { %v1152_v50 = vsel %vm5363_vm8, %v1137_v46, %v1151_v42  ;;  %v1145_v54 = vor.u32 %v1143_v48, %v1142_v47  ;;  %v1147_v55 = vrot.slane %v1142_v47, 4 }
 0x20d   : > { %1153 = vst [vmem:[#allocation2] sm:$0xf] %v1152_v50 }
 0x20e   : > { %v1146_v56 = vsel %vm5377_vm9, %v1138_v49, %v1145_v54  ;;  %v1156_v58 = vsel %vm5236_vm2, %v1147_v55, %v1155_v37 }
 0x20f   : > { %1154 = vst.msk [vmem:[#allocation2 + $0x4] sm:$0xf] %vm994_vm6, %v1146_v56  ;;  %1157 = vst [vmem:[#allocation2 + $0x8] sm:$0x1] %v1156_v58 }
 0x210 PF: > { %p4270_p12 = scmp.ne.s32.totalorder %s5119_s27, 1 }
 0x211   : > { %v1163_v59 = vld [vmem:[#allocation2 + $0x6c] sm:$0xf] (!%p4270_p12)  ;;  %v1167_v60 = vld [vmem:[#allocation2 + $0x74] sm:$0x1] (!%p4270_p12)  ;;  %v5140_v63 = vmov (!%p4270_p12), 0  }
 0x212   : > { %1161 = sbr.rel (%p4270_p12) target bundleno = 537 (0x219), region = 64  ;;  %v1164_v61 = vsel (!%p4270_p12), %vm5363_vm8, 0, %v1163_v59  ;;  %1166 = vst.msk [vmem:[#allocation2 + $0x70] sm:$0xf] (!%p4270_p12), %vm994_vm6, %v5140_v63  ;;  %v1168_v3 = vsel (!%p4270_p12), %vm5236_vm2, 0, %v1167_v60 }
 0x213   : > { %1165 = vst [vmem:[#allocation2 + $0x6c] sm:$0xf] (!%p4270_p12), %v1164_v61  ;;  %1169 = vst [vmem:[#allocation2 + $0x74] sm:$0x1] (!%p4270_p12), %v1168_v3 }
 0x219 PF: > { %p4271_p13 = scmp.ge.s32.totalorder %s5119_s27, 1 }
 0x21a   : > { %v5141_v4 = vmov (!%p4271_p13), 0.0   ;;  %vm5142_vm11 = vmmov (!%p4271_p13), 0   ;;  %v5072_v6 = vld [vmem:[%s5266_s16] sm:$0xff] (!%p4271_p13)   ;;  %v1258_v18 = vld [vmem:[#allocation2 + $0x6c] sm:$0xf] (!%p4271_p13) }
 0x21b   : > { %1173 = sbr.rel (%p4271_p13) target bundleno = 773 (0x305), region = 68  ;;  %4690 = vmatprep.subr.bf16.mxu0 (!%p4271_p13), %v5141_v4  ;;  %4692 = vmatprep.mubr.msk.bf16.mxu0 (!%p4271_p13), %vm5142_vm11, %v5141_v4  ;;  %v1262_v23 = vld [vmem:[#allocation2 + $0x74] sm:$0x1] (!%p4271_p13) }
 0x21c   : > { %4691 = vmatpush3.bf16.msra.mxu0 (!%p4271_p13), %v5226_v0 }
 0x21f   : > { %4693 = vmatmul.mubr.msk.bf16.vlgmr.msra.gmra.mrb[0].mxu0 (!%p4271_p13), %vm605_vm5, %v5072_v6 }
 0x2f2   : > { %v1218_v38 = vpop.f32.mrb[0].mxu0 }
 0x2f3   : > { %v1225_v62 = vmul.f32 %v5327_v51, %v1218_v38  ;;  %v4694_v7 = vpop.f32.mrb[1].mxu0 }
 0x2f4   : > { %v1221_v8 = vpop.f32.mrb[2].mxu0 }
 0x2f5   : > { %v1227_v9 = vadd.f32 %v5332_v52, %v1225_v62  ;;  %v1226_v10 = vmul.f32 %v5327_v51, %v1221_v8  ;;  %v4695_v11 = vpop.f32.mrb[3].mxu0 }
 0x2f7   : > { %v1229_v12 = vmax.f32 %v1227_v9, 0.0  ;;  %v1228_v13 = vadd.f32 %v5332_v52, %v1226_v10 }
 0x2f9   : > { %v4506_v14 = vpack.c.bf16 %v1229_v12, %v1229_v12  ;;  %v1230_v15 = vmax.f32 %v1228_v13, 0.0 }
 0x2fb   : > { %v1238_v57 = vshrl.u32 %v4506_v14, 16  ;;  %v4507_v5 = vpack.c.bf16 %v1230_v15, %v1230_v15  ;;  %v1241_v16 = vshll.u32 %v4506_v14, 16 }
 0x2fd   : > { %v1240_v0 = vrot.slane %v1238_v57, 7  ;;  %v1246_v17 = vshrl.u32 %v4507_v5, 16  ;;  %v1249_v22 = vshll.u32 %v4507_v5, 16 }
 0x2ff   : > { %v1243_v19 = vor.u32 %v1241_v16, %v1240_v0  ;;  %v1248_v21 = vrot.slane %v1246_v17, 7  ;;  %v1244_v26 = vrot.slane %v1240_v0, 4 }
 0x301   : > { %v1259_v51 = vsel %vm5363_vm8, %v1243_v19, %v1258_v18  ;;  %v1251_v27 = vor.u32 %v1249_v22, %v1248_v21  ;;  %v1253_v43 = vrot.slane %v1248_v21, 4 }
 0x302   : > { %1260 = vst [vmem:[#allocation2 + $0x6c] sm:$0xf] %v1259_v51 }
 0x303   : > { %v1252_v52 = vsel %vm5377_vm9, %v1244_v26, %v1251_v27  ;;  %v1263_v24 = vsel %vm5236_vm2, %v1253_v43, %v1262_v23 }
 0x304   : > { %1261 = vst.msk [vmem:[#allocation2 + $0x70] sm:$0xf] %vm994_vm6, %v1252_v52  ;;  %1264 = vst [vmem:[#allocation2 + $0x74] sm:$0x1] %v1263_v24 }
 0x305 PF: > { %vm1538_vm12 = vcmask 1041408   ;;  %v4351_v44 = vld [vmem:[%s6414_s4 + $0x8] sm:$0x3]  ;;  %v4276_v45 = vld [vmem:[%s6414_s4 + $0x2] sm:$0x3]  ;;  %vm1513_vm0 = vcmask 31744  }
 0x306   : > { %5010 = vmatprep.subr.msk.bf16.mxu0 %vm1538_vm12, %v4351_v44  ;;  %5006 = vmatprep.subr.msk.bf16.mxu1 %vm1538_vm12, %v4276_v45  ;;  %v2517_v2 = vsel %vm1538_vm12, %v4351_v44, 0  ;;  %v1540_v1 = vsel %vm1538_vm12, %v4276_v45, 0  ;;  %v5522_v53 = vld [vmem:[#allocation2] sm:$0xf]  ;;  %v5524_v28 = vld [vmem:[#allocation2 + $0x4] sm:$0xf] }
 0x307   : > { %4769 = vmatpush3.bf16.msra.mxu0 %v2517_v2  ;;  %4697 = vmatpush3.bf16.msra.mxu1 %v1540_v1  ;;  %v5526_v29 = vld [vmem:[#allocation2 + $0x8] sm:$0x1]  ;;  %vm1292_vm13 = vsmask.f32 3328  ;;  %vm1293_vm14 = vsmask.f32 7440 }
 0x308   : > { %v1296_v32 = vshrl.u32 %v5522_v53, 16  ;;  %v1299_v33 = vshll.u32 %v5522_v53, 16  ;;  %v1305_v34 = vshll.u32 %v5524_v28, 16  ;;  %v1309_v20 = vshrl.u32 %v5524_v28, 16  ;;  %v2250_v25 = vld [vmem:[#allocation2 + $0xc] sm:$0xf]  ;;  %vm5551_vm15 = vmor %vm1292_vm13, %vm1293_vm14 }
 0x309   : > { %v1315_v35 = vshll.u32 %v5526_v29, 16  ;;  %v5533_v30 = vld [vmem:[#allocation2 + $0x10] sm:$0xf]  ;;  %v5535_v36 = vld [vmem:[#allocation2 + $0x14] sm:$0x1]  ;;  %v2275_v47 = vshrl.u32 %v2250_v25, 16 }
 0x30a   : > { %v1298_v31 = vrot.slane %v1296_v32, 4  ;;  %v1301_v39 = vrot.slane %v1299_v33, 5  ;;  %v1307_v40 = vrot.slane %v1305_v34, 5  ;;  %v1311_v41 = vrot.slane %v1309_v20, 4  ;;  %v5540_v42 = vld [vmem:[%s6414_s4 + $0xa] sm:$0x3] }
 0x30b   : > { %v1317_v46 = vrot.slane %v1315_v35, 5  ;;  %v2278_v48 = vshll.u32 %v2250_v25, 16  ;;  %v2284_v37 = vshll.u32 %v5533_v30, 16  ;;  %5011 = vmatprep.subr.msk.bf16.mxu0 %vm1538_vm12, %v5540_v42  ;;  %v2288_v54 = vshrl.u32 %v5533_v30, 16  ;;  %v5547_v56 = vld [vmem:[#allocation2 + $0xc] sm:$0xf] }
 0x30c   : > { %v1302_v49 = vor.u32 %v1301_v39, %v1298_v31  ;;  %v1312_v50 = vor.u32 %v1311_v41, %v1307_v40  ;;  %v2294_v55 = vshll.u32 %v5535_v36, 16  ;;  %v2277_v59 = vrot.slane %v2275_v47, 4  ;;  %v5555_v63 = vld [vmem:[#allocation2 + $0x10] sm:$0xf]  ;;  %v5557_v7 = vld [vmem:[#allocation2 + $0x14] sm:$0x1] }
 0x30d   : > { %v2280_v60 = vrot.slane %v2278_v48, 5  ;;  %v2286_v61 = vrot.slane %v2284_v37, 5  ;;  %v2290_v6 = vrot.slane %v2288_v54, 4  ;;  %v1320_v8 = vshrl.u32 %v5547_v56, 16  ;;  %v2253_v0 = vld [vmem:[#allocation2 + $0x18] sm:$0xf] }
 0x30e   : > { %v1303_v3 = vrot.slane %v1302_v49, 4  ;;  %v1313_v4 = vrot.slane %v1312_v50, 4  ;;  %v2296_v62 = vrot.slane %v2294_v55, 5  ;;  %v1323_v9 = vshll.u32 %v5547_v56, 16  ;;  %v5568_v21 = vld [vmem:[#allocation2 + $0x1c] sm:$0xf] }
 0x30f   : > { %v2281_v38 = vor.u32 %v2280_v60, %v2277_v59  ;;  %v2291_v12 = vor.u32 %v2290_v6, %v2286_v61  ;;  %v1329_v13 = vshll.u32 %v5555_v63, 16  ;;  %v1322_v57 = vrot.slane %v1320_v8, 4  ;;  %v5573_v26 = vld [vmem:[#allocation2 + $0x20] sm:$0x1]  ;;  %v5580_v20 = vld [vmem:[#allocation2 + $0x18] sm:$0xf] }
 0x310   : > { %v1308_v10 = vsel %vm5551_vm15, %v1303_v3, %v1307_v40  ;;  %v1318_v11 = vsel %vm5551_vm15, %v1313_v4, %v1317_v46  ;;  %v1325_v5 = vrot.slane %v1323_v9, 5  ;;  %v1333_v18 = vshrl.u32 %v5555_v63, 16  ;;  %v5585_v40 = vld [vmem:[#allocation2 + $0x1c] sm:$0xf]  ;;  %v5592_v54 = vld [vmem:[#allocation2 + $0x20] sm:$0x1] }
 0x311   : > { %v4277_v14 = vcombine.low %v1308_v10, %v1318_v11  ;;  %v2282_v15 = vrot.slane %v2281_v38, 4  ;;  %v2292_v16 = vrot.slane %v2291_v12, 4  ;;  %v1331_v17 = vrot.slane %v1329_v13, 5  ;;  %6432 = vst [vmem:[#allocation3_spill] sm:$0xff] %v5592_v54  ;;  %v2256_v4 = vld [vmem:[#allocation2 + $0x24] sm:$0xf] }
 0x312   : > { %v1339_v19 = vshll.u32 %v5557_v7, 16  ;;  %v1326_v23 = vor.u32 %v1325_v5, %v1322_v57  ;;  %v1335_v27 = vrot.slane %v1333_v18, 4  ;;  %v2299_v52 = vshrl.u32 %v2253_v0, 16  ;;  %v5600_v9 = vld [vmem:[#allocation2 + $0x28] sm:$0xf] }
 0x313   : > { %4698 = vmatprep.mubr.msk.bf16.mxu1 %vm1513_vm0, %v4277_v14  ;;  %v2287_v22 = vsel %vm5551_vm15, %v2282_v15, %v2286_v61  ;;  %v2297_v51 = vsel %vm5551_vm15, %v2292_v16, %v2296_v62  ;;  %v2302_v45 = vshll.u32 %v2253_v0, 16  ;;  %v2308_v2 = vshll.u32 %v5568_v21, 16  ;;  %v5606_v15 = vld [vmem:[#allocation2 + $0x2c] sm:$0x1]  ;;  %v5742_v48 = vld [vmem:[#allocation2 + $0x5c] sm:$0x1] }
 0x314   : > { %v1341_v43 = vrot.slane %v1339_v19, 5  ;;  %v4352_v24 = vcombine.low %v2287_v22, %v2297_v51  ;;  %v1327_v44 = vrot.slane %v1326_v23, 4  ;;  %v1336_v1 = vor.u32 %v1335_v27, %v1331_v17  ;;  %v5611_v19 = vld [vmem:[#allocation2 + $0x24] sm:$0xf]  ;;  %6434 = vst [vmem:[#allocation5_spill] sm:$0xff] %v5742_v48 }
 0x315   : > { %v2301_v32 = vrot.slane %v2299_v52, 4  ;;  %v2312_v33 = vshrl.u32 %v5568_v21, 16  ;;  %v2318_v34 = vshll.u32 %v5573_v26, 16  ;;  %v2304_v31 = vrot.slane %v2302_v45, 5  ;;  %v2271_v25 = vld [vmem:[#allocation2 + $0x60] sm:$0xf] }
 0x316   : > { %4770 = vmatprep.mubr.msk.bf16.mxu0 %vm1513_vm0, %v4352_v24  ;;  %v2310_v39 = vrot.slane %v2308_v2, 5  ;;  %v1332_v41 = vsel %vm5551_vm15, %v1327_v44, %v1331_v17  ;;  %v1337_v46 = vrot.slane %v1336_v1, 4  ;;  %v2771_v50 = vsel %vm1538_vm12, %v5540_v42, 0 }
 0x317   : > { %v2314_v47 = vrot.slane %v2312_v33, 4  ;;  %v2305_v37 = vor.u32 %v2304_v31, %v2301_v32  ;;  %v2320_v49 = vrot.slane %v2318_v34, 5  ;;  %v1344_v55 = vshrl.u32 %v5580_v20, 16  ;;  %v5618_v32 = vld [vmem:[#allocation2 + $0x2c] sm:$0x1] }
 0x318   : > { %v1342_v59 = vsel %vm5551_vm15, %v1337_v46, %v1341_v43  ;;  %v1347_v61 = vshll.u32 %v5580_v20, 16  ;;  %v1353_v3 = vshll.u32 %v5585_v40, 16  ;;  %v1357_v8 = vshrl.u32 %v5585_v40, 16  ;;  %v5613_v43 = vld [vmem:[#allocation2 + $0x28] sm:$0xf] }
 0x319   : > { %v2315_v60 = vor.u32 %v2314_v47, %v2310_v39  ;;  %v4278_v6 = vcombine.low %v1332_v41, %v1342_v59  ;;  %v2306_v38 = vrot.slane %v2305_v37, 4  ;;  %v1346_v62 = vrot.slane %v1344_v55, 4  ;;  %v2259_v47 = vld [vmem:[#allocation2 + $0x30] sm:$0xf] }
 0x31a   : > { %v1349_v10 = vrot.slane %v1347_v61, 5  ;;  %v1355_v11 = vrot.slane %v1353_v3, 5  ;;  %v1363_v12 = vshll.u32 %v5592_v54, 16  ;;  %v1359_v14 = vrot.slane %v1357_v8, 4 }
 0x31b   : > { %v2316_v42 = vrot.slane %v2315_v60, 4  ;;  %4699 = vmatmul.mubr.msk.bf16.vlgmr.msra.gmra.mrb[0].mxu1 %vm1513_vm0, %v4278_v6  ;;  %v2311_v13 = vsel %vm5551_vm15, %v2306_v38, %v2310_v39  ;;  %v2323_v57 = vshrl.u32 %v2256_v4, 16  ;;  %v2326_v5 = vshll.u32 %v2256_v4, 16  ;;  %v5627_v60 = vld [vmem:[#allocation2 + $0x34] sm:$0xf] }
 0x31c   : > { %v1350_v16 = vor.u32 %v1349_v10, %v1346_v62  ;;  %v1365_v17 = vrot.slane %v1363_v12, 5  ;;  %v2332_v18 = vshll.u32 %v5600_v9, 16  ;;  %v1360_v23 = vor.u32 %v1359_v14, %v1355_v11 }
 0x31d   : > { %v2321_v0 = vsel %vm5551_vm15, %v2316_v42, %v2320_v49  ;;  %v2325_v51 = vrot.slane %v2323_v57, 4  ;;  %v2328_v27 = vrot.slane %v2326_v5, 5  ;;  %v2336_v44 = vshrl.u32 %v5600_v9, 16 }
 0x31e   : > { %v4353_v22 = vcombine.low %v2311_v13, %v2321_v0  ;;  %v1351_v52 = vrot.slane %v1350_v16, 4  ;;  %v2334_v24 = vrot.slane %v2332_v18, 5  ;;  %v2342_v45 = vshll.u32 %v5606_v15, 16  ;;  %v5638_v16 = vld [vmem:[#allocation2 + $0x30] sm:$0xf] }
 0x31f   : > { %v1361_v2 = vrot.slane %v1360_v23, 4  ;;  %v2329_v1 = vor.u32 %v2328_v27, %v2325_v51  ;;  %v1368_v33 = vshrl.u32 %v5611_v19, 16  ;;  %v1371_v34 = vshll.u32 %v5611_v19, 16  ;;  %v5642_v51 = vld [vmem:[#allocation2 + $0x34] sm:$0xf] }
 0x320   : > { %4771 = vmatmul.mubr.msk.bf16.vlgmr.msra.gmra.mrb[0].mxu0 %vm1513_vm0, %v4353_v22  ;;  %v1356_v31 = vsel %vm5551_vm15, %v1351_v52, %v1355_v11  ;;  %v2338_v39 = vrot.slane %v2336_v44, 4  ;;  %v2344_v41 = vrot.slane %v2342_v45, 5  ;;  %v1377_v46 = vshll.u32 %v5613_v43, 16  ;;  %v5634_v11 = vld [vmem:[#allocation2 + $0x38] sm:$0x1] }
 0x321   : > { %4787 = vmatpush3.bf16.msra.mxu0 %v2771_v50  ;;  %v1366_v37 = vsel %vm5551_vm15, %v1361_v2, %v1365_v17  ;;  %v2330_v49 = vrot.slane %v2329_v1, 4  ;;  %v1370_v55 = vrot.slane %v1368_v33, 4  ;;  %v1373_v59 = vrot.slane %v1371_v34, 5  ;;  %v5647_v45 = vld [vmem:[#allocation2 + $0x38] sm:$0x1] }
 0x322   : > { %v4279_v61 = vcombine.low %v1356_v31, %v1366_v37  ;;  %v2339_v3 = vor.u32 %v2338_v39, %v2334_v24  ;;  %v1379_v4 = vrot.slane %v1377_v46, 5  ;;  %v1381_v50 = vshrl.u32 %v5613_v43, 16  ;;  %v2262_v31 = vld [vmem:[#allocation2 + $0x3c] sm:$0xf]  ;;  %v5657_v37 = vld [vmem:[%s6414_s4] sm:$0x3] }
 0x323   : > { %v2335_v6 = vsel %vm5551_vm15, %v2330_v49, %v2334_v24  ;;  %v1374_v38 = vor.u32 %v1373_v59, %v1370_v55  ;;  %v1387_v62 = vshll.u32 %v5618_v32, 16  ;;  %v2347_v8 = vshrl.u32 %v2259_v47, 16  ;;  %5007 = vmatprep.subr.msk.bf16.mxu1 %vm1538_vm12, %v5657_v37 }
 0x324   : > { %4702 = vmatprep.mubr.msk.bf16.mxu1 %vm1513_vm0, %v4279_v61  ;;  %v2340_v42 = vrot.slane %v2339_v3, 4  ;;  %v1383_v10 = vrot.slane %v1381_v50, 4  ;;  %v2350_v12 = vshll.u32 %v2259_v47, 16  ;;  %v2356_v13 = vshll.u32 %v5627_v60, 16  ;;  %v5661_v3 = vld [vmem:[#allocation2 + $0x40] sm:$0xf] }
 0x325   : > { %v1375_v14 = vrot.slane %v1374_v38, 4  ;;  %v1389_v57 = vrot.slane %v1387_v62, 5  ;;  %v2349_v5 = vrot.slane %v2347_v8, 4  ;;  %v2360_v0 = vshrl.u32 %v5627_v60, 16  ;;  %v5668_v62 = vld [vmem:[%s6414_s4 + $0xc] sm:$0x3] }
 0x326   : > { %v2345_v17 = vsel %vm5551_vm15, %v2340_v42, %v2344_v41  ;;  %v1384_v18 = vor.u32 %v1383_v10, %v1379_v4  ;;  %v2352_v22 = vrot.slane %v2350_v12, 5  ;;  %v2358_v23 = vrot.slane %v2356_v13, 5  ;;  %5012 = vmatprep.subr.msk.bf16.mxu0 %vm1538_vm12, %v5668_v62 }
 0x327   : > { %v4354_v27 = vcombine.low %v2335_v6, %v2345_v17  ;;  %v1380_v52 = vsel %vm5551_vm15, %v1375_v14, %v1379_v4  ;;  %v2362_v24 = vrot.slane %v2360_v0, 4  ;;  %v2366_v44 = vshll.u32 %v5634_v11, 16  ;;  %v5681_v17 = vld [vmem:[#allocation2 + $0x3c] sm:$0xf] }
 0x328   : > { %v1385_v2 = vrot.slane %v1384_v18, 4  ;;  %v2353_v1 = vor.u32 %v2352_v22, %v2349_v5  ;;  %v1392_v33 = vshrl.u32 %v5638_v16, 16  ;;  %v1395_v34 = vshll.u32 %v5638_v16, 16 }
 0x329   : > { %4774 = vmatprep.mubr.msk.bf16.mxu0 %vm1513_vm0, %v4354_v27  ;;  %v2363_v39 = vor.u32 %v2362_v24, %v2358_v23  ;;  %v2368_v41 = vrot.slane %v2366_v44, 5  ;;  %v1401_v46 = vshll.u32 %v5642_v51, 16  ;;  %v1405_v47 = vshrl.u32 %v5642_v51, 16 }
 0x32a   : > { %v1390_v49 = vsel %vm5551_vm15, %v1385_v2, %v1389_v57  ;;  %v2354_v55 = vrot.slane %v2353_v1, 4  ;;  %v1394_v59 = vrot.slane %v1392_v33, 4  ;;  %v1397_v61 = vrot.slane %v1395_v34, 5  ;;  %v5678_v57 = vld [vmem:[#allocation2 + $0x44] sm:$0x1] }
 0x32b   : > { %v4280_v4 = vcombine.low %v1380_v52, %v1390_v49  ;;  %v2364_v50 = vrot.slane %v2363_v39, 4  ;;  %v1403_v6 = vrot.slane %v1401_v46, 5  ;;  %v1407_v38 = vrot.slane %v1405_v47, 4  ;;  %v5683_v52 = vld [vmem:[#allocation2 + $0x40] sm:$0xf] }
 0x32c   : > { %v2359_v8 = vsel %vm5551_vm15, %v2354_v55, %v2358_v23  ;;  %v1398_v42 = vor.u32 %v1397_v61, %v1394_v59  ;;  %v1411_v10 = vshll.u32 %v5647_v45, 16  ;;  %v2371_v12 = vshrl.u32 %v2262_v31, 16  ;;  %v2265_v59 = vld [vmem:[#allocation2 + $0x48] sm:$0xf]  ;;  %v5697_v61 = vld [vmem:[#allocation2 + $0x4c] sm:$0xf] }
 0x32d   : > { %4703 = vmatmul.mubr.msk.bf16.gmra.mrb[4].mxu1 %vm1513_vm0, %v4280_v4  ;;  %v2369_v13 = vsel %vm5551_vm15, %v2364_v50, %v2368_v41  ;;  %v1408_v14 = vor.u32 %v1407_v38, %v1403_v6  ;;  %v2374_v5 = vshll.u32 %v2262_v31, 16  ;;  %v2380_v0 = vshll.u32 %v5661_v3, 16  ;;  %v5690_v31 = vld [vmem:[#allocation2 + $0x44] sm:$0x1] }
 0x32e   : > { %v4355_v18 = vcombine.low %v2359_v8, %v2369_v13  ;;  %v1399_v22 = vrot.slane %v1398_v42, 4  ;;  %v1413_v23 = vrot.slane %v1411_v10, 5  ;;  %v2373_v27 = vrot.slane %v2371_v12, 4 }
 0x32f   : > { %v1409_v24 = vrot.slane %v1408_v14, 4  ;;  %v2376_v44 = vrot.slane %v2374_v5, 5  ;;  %v2382_v2 = vrot.slane %v2380_v0, 5  ;;  %v2384_v1 = vshrl.u32 %v5661_v3, 16  ;;  %v5702_v5 = vld [vmem:[#allocation2 + $0x50] sm:$0x1] }
 0x330   : > { %4775 = vmatmul.mubr.msk.bf16.gmra.mrb[4].mxu0 %vm1513_vm0, %v4355_v18  ;;  %v1404_v33 = vsel %vm5551_vm15, %v1399_v22, %v1403_v6  ;;  %v2390_v34 = vshll.u32 %v5678_v57, 16  ;;  %v1416_v39 = vshrl.u32 %v5681_v17, 16  ;;  %v1419_v41 = vshll.u32 %v5681_v17, 16 }
 0x331   : > { %v1414_v46 = vsel %vm5551_vm15, %v1409_v24, %v1413_v23  ;;  %v2377_v47 = vor.u32 %v2376_v44, %v2373_v27  ;;  %v2386_v49 = vrot.slane %v2384_v1, 4  ;;  %v1425_v55 = vshll.u32 %v5683_v52, 16  ;;  %v5707_v44 = vld [vmem:[#allocation2 + $0x48] sm:$0xf] }
 0x332   : > { %v4281_v4 = vcombine.low %v1404_v33, %v1414_v46  ;;  %v2392_v50 = vrot.slane %v2390_v34, 5  ;;  %v1418_v6 = vrot.slane %v1416_v39, 4  ;;  %v1421_v38 = vrot.slane %v1419_v41, 5 }
 0x333   : > { %v2378_v8 = vrot.slane %v2377_v47, 4  ;;  %v2387_v42 = vor.u32 %v2386_v49, %v2382_v2  ;;  %v1427_v10 = vrot.slane %v1425_v55, 5  ;;  %v1429_v12 = vshrl.u32 %v5683_v52, 16  ;;  %v5712_v55 = vld [vmem:[#allocation2 + $0x4c] sm:$0xf] }
 0x334   : > { %4706 = vmatprep.mubr.msk.bf16.mxu1 %vm1513_vm0, %v4281_v4  ;;  %v1422_v13 = vor.u32 %v1421_v38, %v1418_v6  ;;  %v1435_v14 = vshll.u32 %v5690_v31, 16  ;;  %v2395_v0 = vshrl.u32 %v2265_v59, 16  ;;  %v2398_v18 = vshll.u32 %v2265_v59, 16  ;;  %v5717_v38 = vld [vmem:[#allocation2 + $0x50] sm:$0x1] }
 0x335   : > { %v2383_v22 = vsel %vm5551_vm15, %v2378_v8, %v2382_v2  ;;  %v2388_v23 = vrot.slane %v2387_v42, 4  ;;  %v1431_v27 = vrot.slane %v1429_v12, 4  ;;  %v2404_v24 = vshll.u32 %v5697_v61, 16 }
 0x336   : > { %v1423_v1 = vrot.slane %v1422_v13, 4  ;;  %v1437_v33 = vrot.slane %v1435_v14, 5  ;;  %v2397_v34 = vrot.slane %v2395_v0, 4  ;;  %v2400_v39 = vrot.slane %v2398_v18, 5  ;;  %v2268_v13 = vld [vmem:[#allocation2 + $0x54] sm:$0xf] }
 0x337   : > { %v2393_v41 = vsel %vm5551_vm15, %v2388_v23, %v2392_v50  ;;  %v1432_v46 = vor.u32 %v1431_v27, %v1427_v10  ;;  %v2406_v47 = vrot.slane %v2404_v24, 5  ;;  %v2408_v49 = vshrl.u32 %v5697_v61, 16 }
 0x338   : > { %v4356_v2 = vcombine.low %v2383_v22, %v2393_v41  ;;  %v1428_v59 = vsel %vm5551_vm15, %v1423_v1, %v1427_v10  ;;  %v2401_v4 = vor.u32 %v2400_v39, %v2397_v34  ;;  %v2414_v6 = vshll.u32 %v5702_v5, 16  ;;  %v5726_v1 = vld [vmem:[#allocation2 + $0x58] sm:$0xf] }
 0x339   : > { %v1433_v8 = vrot.slane %v1432_v46, 4  ;;  %v2410_v42 = vrot.slane %v2408_v49, 4  ;;  %v1440_v12 = vshrl.u32 %v5707_v44, 16  ;;  %v1443_v50 = vshll.u32 %v5707_v44, 16  ;;  %v5730_v49 = vld [vmem:[#allocation2 + $0x5c] sm:$0x1] }
 0x33a   : > { %4778 = vmatprep.mubr.msk.bf16.mxu0 %vm1513_vm0, %v4356_v2  ;;  %v2402_v14 = vrot.slane %v2401_v4, 4  ;;  %v2416_v0 = vrot.slane %v2414_v6, 5  ;;  %v1449_v18 = vshll.u32 %v5712_v55, 16  ;;  %v1453_v10 = vshrl.u32 %v5712_v55, 16  ;;  %v5732_v2 = vld [vmem:[#allocation2 + $0x54] sm:$0xf] }
 0x33b   : > { %v1438_v22 = vsel %vm5551_vm15, %v1433_v8, %v1437_v33  ;;  %v2411_v23 = vor.u32 %v2410_v42, %v2406_v47  ;;  %v1442_v27 = vrot.slane %v1440_v12, 4  ;;  %v1445_v24 = vrot.slane %v1443_v50, 5  ;;  %6433 = vst [vmem:[#allocation4_spill] sm:$0xff] %v5732_v2  ;;  %v5735_v8 = vld [vmem:[#allocation2 + $0x58] sm:$0xf] }
 0x33c   : > { %v4282_v34 = vcombine.low %v1428_v59, %v1438_v22  ;;  %v2407_v39 = vsel %vm5551_vm15, %v2402_v14, %v2406_v47  ;;  %v1451_v41 = vrot.slane %v1449_v18, 5  ;;  %v1455_v46 = vrot.slane %v1453_v10, 4 }
 0x33d   : > { %v2412_v4 = vrot.slane %v2411_v23, 4  ;;  %v1446_v6 = vor.u32 %v1445_v24, %v1442_v27  ;;  %v1459_v35 = vshll.u32 %v5717_v38, 16  ;;  %v2419_v33 = vshrl.u32 %v2268_v13, 16 }
 0x33e   : > { %4707 = vmatmul.mubr.msk.bf16.gmra.mrb[8].mxu1 %vm1513_vm0, %v4282_v34  ;;  %v1456_v42 = vor.u32 %v1455_v46, %v1451_v41  ;;  %v2422_v59 = vshll.u32 %v2268_v13, 16  ;;  %v2428_v12 = vshll.u32 %v5726_v1, 16  ;;  %v2432_v47 = vshrl.u32 %v5726_v1, 16 }
 0x33f   : > { %v2417_v50 = vsel %vm5551_vm15, %v2412_v4, %v2416_v0  ;;  %v1447_v14 = vrot.slane %v1446_v6, 4  ;;  %v1461_v18 = vrot.slane %v1459_v35, 5  ;;  %v2421_v10 = vrot.slane %v2419_v33, 4  ;;  %v5753_v6 = vld [vmem:[#allocation2 + $0x64] sm:$0xf] }
 0x340   : > { %v4357_v22 = vcombine.low %v2407_v39, %v2417_v50  ;;  %v1457_v23 = vrot.slane %v1456_v42, 4  ;;  %v2424_v27 = vrot.slane %v2422_v59, 5  ;;  %v2430_v24 = vrot.slane %v2428_v12, 5 }
 0x341   : > { %v1452_v13 = vsel %vm5551_vm15, %v1447_v14, %v1451_v41  ;;  %v2434_v34 = vrot.slane %v2432_v47, 4  ;;  %v2438_v46 = vshll.u32 %v5730_v49, 16  ;;  %v1464_v54 = vshrl.u32 %v5732_v2, 16 }
 0x342   : > { %4779 = vmatmul.mubr.msk.bf16.gmra.mrb[8].mxu0 %vm1513_vm0, %v4357_v22  ;;  %v1462_v35 = vsel %vm5551_vm15, %v1457_v23, %v1461_v18  ;;  %v2425_v0 = vor.u32 %v2424_v27, %v2421_v10  ;;  %v1467_v39 = vshll.u32 %v5732_v2, 16  ;;  %v1473_v4 = vshll.u32 %v5735_v8, 16 }
 0x343   : > { %v4283_v33 = vcombine.low %v1452_v13, %v1462_v35  ;;  %v2435_v42 = vor.u32 %v2434_v34, %v2430_v24  ;;  %v2440_v41 = vrot.slane %v2438_v46, 5  ;;  %v1466_v59 = vrot.slane %v1464_v54, 4  ;;  %v5760_v34 = vld [vmem:[#allocation2 + $0x68] sm:$0x1] }
 0x344   : > { %v2426_v12 = vrot.slane %v2425_v0, 4  ;;  %v1469_v47 = vrot.slane %v1467_v39, 5  ;;  %v1475_v50 = vrot.slane %v1473_v4, 5  ;;  %v1477_v14 = vshrl.u32 %v5735_v8, 16 }
 0x345   : > { %4710 = vmatprep.mubr.msk.bf16.mxu1 %vm1513_vm0, %v4283_v33  ;;  %v2436_v22 = vrot.slane %v2435_v42, 4  ;;  %v1483_v18 = vshll.u32 %v5742_v48, 16  ;;  %v2443_v10 = vshrl.u32 %v2271_v25, 16  ;;  %v2446_v23 = vshll.u32 %v2271_v25, 16  ;;  %v2632_v25 = vld [vmem:[#allocation2 + $0xc] sm:$0xe] }
 0x346   : > { %v2431_v27 = vsel %vm5551_vm15, %v2426_v12, %v2430_v24  ;;  %v1470_v2 = vor.u32 %v1469_v47, %v1466_v59  ;;  %v1479_v13 = vrot.slane %v1477_v14, 4  ;;  %v2452_v54 = vshll.u32 %v5753_v6, 16  ;;  %v5768_v24 = vld [vmem:[%s6414_s4 + $0x4] sm:$0x3] }
 0x347   : > { %v2441_v46 = vsel %vm5551_vm15, %v2436_v22, %v2440_v41  ;;  %v1485_v35 = vrot.slane %v1483_v18, 5  ;;  %v2445_v0 = vrot.slane %v2443_v10, 4  ;;  %v2448_v39 = vrot.slane %v2446_v23, 5 }
 0x348   : > { %v4358_v4 = vcombine.low %v2431_v27, %v2441_v46  ;;  %v1471_v33 = vrot.slane %v1470_v2, 4  ;;  %v1480_v42 = vor.u32 %v1479_v13, %v1475_v50  ;;  %v2454_v48 = vrot.slane %v2452_v54, 5  ;;  %v2633_v46 = vld [vmem:[#allocation2 + $0x18] sm:$0xe] }
 0x349   : > { %v2449_v59 = vor.u32 %v2448_v39, %v2445_v0  ;;  %v2456_v12 = vshrl.u32 %v5753_v6, 16  ;;  %v2462_v47 = vshll.u32 %v5760_v34, 16  ;;  %v1704_v41 = vsel %vm1538_vm12, %v5657_v37, 0  ;;  %v2634_v0 = vld [vmem:[#allocation2 + $0x24] sm:$0xe] }
 0x34a   : > { %4782 = vmatprep.mubr.msk.bf16.mxu0 %vm1513_vm0, %v4358_v4  ;;  %v1476_v2 = vsel %vm5551_vm15, %v1471_v33, %v1475_v50  ;;  %v1481_v14 = vrot.slane %v1480_v42, 4  ;;  %4715 = vmatpush3.bf16.msra.mxu1 %v1704_v41  ;;  %vm1827_vm1 = vcmask 1042432   ;;  %vm1828_vm2 = vcmask 1046532  }
 0x34b   : > { %v2450_v22 = vrot.slane %v2449_v59, 4  ;;  %v2458_v18 = vrot.slane %v2456_v12, 4  ;;  %vm5777_vm3 = vmor %vm1827_vm1, %vm1828_vm2  ;;  %v4368_v23 = vrot.slane %v2632_v25, 9  ;;  %5008 = vmatprep.subr.msk.bf16.mxu1 %vm1538_vm12, %v5768_v24  ;;  %v4293_v50 = vcombine.low %v5522_v53, %v5524_v28 }
 0x34c   : > { %v1486_v37 = vsel %vm5551_vm15, %v1481_v14, %v1485_v35  ;;  %v6437_v27 = vrot.slane %v5533_v30, 5  ;;  %v4294_v54 = vcombine.low %v5547_v56, %v5555_v63  ;;  %v2464_v33 = vrot.slane %v2462_v47, 5 }
 0x34d   : > { %v4284_v39 = vcombine.low %v1476_v2, %v1486_v37  ;;  %v2459_v4 = vor.u32 %v2458_v18, %v2454_v48  ;;  %v6439_v35 = vrot.slane %v5568_v21, 5  ;;  %v2676_v53 = vrot.slane %v5573_v26, 5 }
 0x34e   : > { %v2668_v13 = vrot.slane %v6437_v27, 4  ;;  %v6438_v42 = vmov %v6437_v27  ;;  %v6440_v12 = vrot.slane %v5535_v36, 5  ;;  %v2455_v47 = vsel %vm5551_vm15, %v2450_v22, %v2454_v48 }
 0x34f   : > { %v2667_v25 = vsel %vm5777_vm3, %v4368_v23, %v6438_v42  ;;  %v2675_v59 = vrot.slane %v6439_v35, 4  ;;  %4711 = vmatmul.mubr.msk.bf16.gmra.mrb[12].mxu1 %vm1513_vm0, %v4284_v39  ;;  %v2460_v41 = vrot.slane %v2459_v4, 4  ;;  %v4369_v2 = vrot.slane %v2633_v46, 9  ;;  %v2635_v23 = vld [vmem:[#allocation2 + $0x30] sm:$0xe] }
 0x350   : > { %v2670_v56 = vsel %vm5777_vm3, %v2668_v13, %v6440_v12  ;;  %4716 = vmatprep.mubr.msk.bf16.mxu1 %vm1513_vm0, %v4293_v50  ;;  %v4370_v14 = vrot.slane %v2634_v0, 9  ;;  %v2680_v18 = vrot.slane %v5600_v9, 5  ;;  %v2683_v36 = vrot.slane %v5606_v15, 5  ;;  %v2636_v39 = vld [vmem:[#allocation2 + $0x3c] sm:$0xe] }
 0x351   : > { %v4377_v30 = vcombine.low %v2667_v25, %v2670_v56  ;;  %v2465_v26 = vsel %vm5551_vm15, %v2460_v41, %v2464_v33  ;;  %v2687_v37 = vrot.slane %v5627_v60, 5  ;;  %v6441_v48 = vmov %v6439_v35  ;;  %v2637_v4 = vld [vmem:[#allocation2 + $0x48] sm:$0xe]  ;;  %v2638_v12 = vld [vmem:[#allocation2 + $0x54] sm:$0xe] }
 0x352   : > { %v4359_v27 = vcombine.low %v2455_v47, %v2465_v26  ;;  %v2682_v13 = vrot.slane %v2680_v18, 4  ;;  %v2674_v22 = vsel %vm5777_vm3, %v4369_v2, %v6441_v48  ;;  %v2677_v50 = vsel %vm5777_vm3, %v2675_v59, %v2676_v53  ;;  %v5856_v2 = vld [vmem:[%s6414_s4 + $0x6] sm:$0x3] }
 0x353   : > { %v4295_v9 = vcombine.low %v5580_v20, %v5585_v40  ;;  %v2694_v46 = vrot.slane %v5661_v3, 5  ;;  %v2681_v15 = vsel %vm5777_vm3, %v4370_v14, %v2680_v18  ;;  %v4371_v60 = vrot.slane %v2635_v23, 9 }
 0x354   : > { %4783 = vmatmul.mubr.msk.bf16.gmra.mrb[12].mxu0 %vm1513_vm0, %v4359_v27  ;;  %v2689_v0 = vrot.slane %v2687_v37, 4  ;;  %v2690_v21 = vrot.slane %v5634_v11, 5  ;;  %v2684_v33 = vsel %vm5777_vm3, %v2682_v13, %v2683_v36  ;;  %v4372_v42 = vrot.slane %v2636_v39, 9  ;;  %v5868_v13 = vld [vmem:[#allocation2 + $0x60] sm:$0xe] }
 0x355   : > { %4788 = vmatprep.mubr.msk.bf16.mxu0 %vm1513_vm0, %v4377_v30  ;;  %v2696_v25 = vrot.slane %v2694_v46, 4  ;;  %v2697_v20 = vrot.slane %v5678_v57, 5  ;;  %v1835_v3 = vrot.slane %v5526_v29, 5  ;;  %v2701_v35 = vrot.slane %v5697_v61, 5 }
 0x356   : > { %v1839_v59 = vrot.slane %v5555_v63, 5  ;;  %v4378_v53 = vcombine.low %v2674_v22, %v2677_v50  ;;  %v2970_v11 = vsel %vm1538_vm12, %v5668_v62, 0  ;;  %v2708_v56 = vrot.slane %v5726_v1, 5 }
 0x357   : > { %4717 = vmatmul.mubr.msk.bf16.vlgmr.msra.gmra.mrb[0].mxu1 %vm1513_vm0, %v4294_v54  ;;  %v4379_v47 = vcombine.low %v2681_v15, %v2684_v33  ;;  %v5838_v57 = vsel %vm5777_vm3, %v4371_v60, %v2687_v37  ;;  %v5842_v61 = vsel %vm5777_vm3, %v2689_v0, %v2690_v21  ;;  %v4373_v63 = vrot.slane %v2637_v4, 9  ;;  %v1804_v54 = vld [vmem:[#allocation2 + $0xc] sm:$0xe]  ;;  %v1807_v21 = vld [vmem:[#allocation2 + $0x30] sm:$0xe] }
 0x358   : > { %4720 = vmatprep.mubr.msk.bf16.mxu1 %vm1513_vm0, %v4295_v9  ;;  %v5846_v41 = vsel %vm5777_vm3, %v4372_v42, %v2694_v46  ;;  %v5850_v62 = vsel %vm5777_vm3, %v2696_v25, %v2697_v20  ;;  %v2703_v1 = vrot.slane %v2701_v35, 4  ;;  %v2704_v30 = vrot.slane %v5702_v5, 5  ;;  %v1806_v9 = vld [vmem:[#allocation2 + $0x24] sm:$0xe] }
 0x359   : > { %v4374_v14 = vrot.slane %v2638_v12, 9  ;;  %v2710_v18 = vrot.slane %v2708_v56, 4  ;;  %v2711_v26 = vrot.slane %v5730_v49, 5  ;;  %v1937_v36 = vsel %vm1538_vm12, %v5768_v24, 0  ;;  %v5873_v49 = vld [vmem:[%s6414_s4 + $0xe] sm:$0x3] }
 0x35a   : > { %v1842_v23 = vrot.slane %v5557_v7, 5  ;;  %v4296_v37 = vcombine.low %v5611_v19, %v5613_v43  ;;  %v4297_v5 = vcombine.low %v5638_v16, %v5642_v51  ;;  %v4298_v27 = vcombine.low %v5681_v17, %v5683_v52  ;;  %4733 = vmatpush3.bf16.msra.mxu1 %v1937_v36  ;;  %v5880_v16 = vld [vmem:[#allocation2] sm:$0xe] }
 0x35b   : > { %v4380_v7 = vcombine.low %v5838_v57, %v5842_v61  ;;  %v4299_v19 = vcombine.low %v5707_v44, %v5712_v55  ;;  %v4310_v24 = vrot.slane %v1804_v54, 9  ;;  %v1841_v39 = vrot.slane %v1839_v59, 4  ;;  %5009 = vmatprep.subr.msk.bf16.mxu1 %vm1538_vm12, %v5856_v2 }
 0x35c   : > { %4789 = vmatmul.mubr.msk.bf16.vlgmr.msra.gmra.mrb[0].mxu0 %vm1513_vm0, %v4378_v53  ;;  %v4381_v48 = vcombine.low %v5846_v41, %v5850_v62  ;;  %v5889_v22 = vsel %vm5777_vm3, %v4373_v63, %v2701_v35  ;;  %v5893_v44 = vsel %vm5777_vm3, %v2703_v1, %v2704_v30  ;;  %v2715_v50 = vrot.slane %v5753_v6, 5  ;;  %v1808_v53 = vld [vmem:[#allocation2 + $0x3c] sm:$0xe]  ;;  %v1810_v30 = vld [vmem:[#allocation2 + $0x54] sm:$0xe] }
 0x35d   : > { %4805 = vmatpush3.bf16.msra.mxu0 %v2970_v11  ;;  %4792 = vmatprep.mubr.msk.bf16.mxu0 %vm1513_vm0, %v4379_v47  ;;  %v5898_v46 = vsel %vm5777_vm3, %v4374_v14, %v2708_v56  ;;  %v5902_v15 = vsel %vm5777_vm3, %v2710_v18, %v2711_v26  ;;  %v1832_v60 = vrot.slane %v5524_v28, 5  ;;  %v5909_v0 = vsel %vm5777_vm3, %v4310_v24, %v1839_v59  ;;  %v1809_v47 = vld [vmem:[#allocation2 + $0x48] sm:$0xe] }
 0x35e   : > { %5013 = vmatprep.subr.msk.bf16.mxu0 %vm1538_vm12, %v5873_v49  ;;  %v4375_v4 = vrot.slane %v5868_v13, 9  ;;  %v2718_v33 = vrot.slane %v5760_v34, 5  ;;  %v4309_v42 = vrot.slane %v5880_v16, 9  ;;  %v5917_v25 = vsel %vm5777_vm3, %v1841_v39, %v1842_v23 }
 0x35f   : > { %4721 = vmatmul.mubr.msk.bf16.gmra.mrb[4].mxu1 %vm1513_vm0, %v4296_v37  ;;  %v4382_v28 = vcombine.low %v5889_v22, %v5893_v44  ;;  %v4319_v20 = vcombine.low %v5909_v0, %v5917_v25  ;;  %v4312_v35 = vrot.slane %v1806_v9, 9  ;;  %v1853_v59 = vrot.slane %v5613_v43, 5  ;;  %v1805_v9 = vld [vmem:[#allocation2 + $0x18] sm:$0xe]  ;;  %v3088_v0 = vld [vmem:[#allocation2 + $0x24] sm:$0xf] }
 0x360   : > { %4724 = vmatprep.mubr.msk.bf16.mxu1 %vm1513_vm0, %v4297_v5  ;;  %v4383_v34 = vcombine.low %v5898_v46, %v5902_v15  ;;  %v2717_v11 = vrot.slane %v2715_v50, 4  ;;  %v1856_v12 = vrot.slane %v5618_v32, 5  ;;  %v4313_v56 = vrot.slane %v1807_v21, 9  ;;  %v6037_v25 = vld [vmem:[#allocation2 + $0x28] sm:$0xf] }
 0x361   : > { %v1834_v57 = vrot.slane %v1832_v60, 4  ;;  %v5932_v61 = vsel %vm5777_vm3, %v4312_v35, %v1853_v59  ;;  %v1855_v63 = vrot.slane %v1853_v59, 4  ;;  %v1860_v54 = vrot.slane %v5642_v51, 5 }
 0x362   : > { %v1863_v43 = vrot.slane %v5647_v45, 5  ;;  %v4314_v41 = vrot.slane %v1808_v53, 9  ;;  %v1867_v62 = vrot.slane %v5683_v52, 5  ;;  %v1870_v1 = vrot.slane %v5690_v31, 5  ;;  %v6444_v53 = vld [vmem:[#allocation3_spill] sm:$0xff] }
 0x363   : > { %v5941_v32 = vsel %vm5777_vm3, %v1855_v63, %v1856_v12  ;;  %v5945_v14 = vsel %vm5777_vm3, %v4313_v56, %v1860_v54  ;;  %v1862_v18 = vrot.slane %v1860_v54, 4  ;;  %v4315_v51 = vrot.slane %v1809_v47, 9  ;;  %v5083_v56 = vld [vmem:[#allocation2 + $0x30] sm:$0xff]   ;;  %v6028_v47 = vld [vmem:[#allocation2 + $0x1c] sm:$0xf] }
 0x364   : > { %4793 = vmatmul.mubr.msk.bf16.gmra.mrb[4].mxu0 %vm1513_vm0, %v4380_v7  ;;  %v4321_v45 = vcombine.low %v5932_v61, %v5941_v32  ;;  %v5952_v31 = vsel %vm5777_vm3, %v4314_v41, %v1867_v62  ;;  %v1869_v26 = vrot.slane %v1867_v62, 4  ;;  %v1874_v36 = vrot.slane %v5712_v55, 5  ;;  %v6061_v32 = vld [vmem:[#allocation2 + $0x34] sm:$0xf] }
 0x365   : > { %4796 = vmatprep.mubr.msk.bf16.mxu0 %vm1513_vm0, %v4381_v48  ;;  %v5957_v23 = vsel %vm5777_vm3, %v1862_v18, %v1863_v43  ;;  %v1877_v37 = vrot.slane %v5717_v38, 5  ;;  %v4316_v5 = vrot.slane %v1810_v30, 9  ;;  %v1881_v13 = vrot.slane %v5735_v8, 5 }
 0x366   : > { %v4322_v7 = vcombine.low %v5945_v14, %v5957_v23  ;;  %v5969_v55 = vsel %vm5777_vm3, %v1869_v26, %v1870_v1  ;;  %v5973_v16 = vsel %vm5777_vm3, %v4315_v51, %v1874_v36  ;;  %v1876_v38 = vrot.slane %v1874_v36, 4  ;;  %v5084_v51 = vld [vmem:[#allocation2 + $0x3c] sm:$0xff]  }
 0x367   : > { %4725 = vmatmul.mubr.msk.bf16.gmra.mrb[8].mxu1 %vm1513_vm0, %v4298_v27  ;;  %v4323_v24 = vcombine.low %v5952_v31, %v5969_v55  ;;  %v5980_v17 = vsel %vm5777_vm3, %v4316_v5, %v1881_v13  ;;  %v1883_v52 = vrot.slane %v1881_v13, 4  ;;  %v6442_v27 = vld [vmem:[#allocation5_spill] sm:$0xff]  ;;  %v1833_v48 = vsel %vm5777_vm3, %v4309_v42, %v1832_v60  ;;  %v6443_v60 = vld [vmem:[#allocation4_spill] sm:$0xff] }
 0x368   : > { %4728 = vmatprep.mubr.msk.bf16.mxu1 %vm1513_vm0, %v4299_v19  ;;  %v1884_v39 = vrot.slane %v6442_v27, 5  ;;  %v1836_v22 = vsel %vm5777_vm3, %v1834_v57, %v1835_v3  ;;  %v1846_v19 = vrot.slane %v5585_v40, 5  ;;  %v5992_v44 = vsel %vm5777_vm3, %v1876_v38, %v1877_v37  ;;  %v5085_v37 = vld [vmem:[#allocation2 + $0x48] sm:$0xff]   ;;  %v6057_v5 = vld [vmem:[#allocation2 + $0x20] sm:$0x1] }
 0x369   : > { %v4324_v46 = vcombine.low %v5973_v16, %v5992_v44  ;;  %v4300_v29 = vcombine.low %v6443_v60, %v5735_v8  ;;  %v2716_v40 = vsel %vm5777_vm3, %v4375_v4, %v2715_v50  ;;  %v4318_v21 = vcombine.low %v1833_v48, %v1836_v22  ;;  %v3091_v38 = vld [vmem:[#allocation2 + $0x30] sm:$0xf] }
 0x36a   : > { %v5998_v15 = vsel %vm5777_vm3, %v1883_v52, %v1884_v39  ;;  %v2719_v42 = vsel %vm5777_vm3, %v2717_v11, %v2718_v33  ;;  %v4311_v35 = vrot.slane %v1805_v9, 9  ;;  %v1848_v59 = vrot.slane %v1846_v19, 4  ;;  %v5082_v11 = vld [vmem:[#allocation2 + $0x24] sm:$0xff]   ;;  %v5086_v9 = vld [vmem:[#allocation2 + $0x54] sm:$0xff]  }
 0x36b   : > { %v4325_v3 = vcombine.low %v5980_v17, %v5998_v15  ;;  %v1849_v8 = vrot.slane %v6444_v53, 5  ;;  %v4384_v12 = vcombine.low %v2716_v40, %v2719_v42  ;;  %v2135_v33 = vsel %vm1538_vm12, %v5856_v2, 0  ;;  %v6035_v2 = vld [vmem:[%s6414_s4 + $0x10] sm:$0x3]  ;;  %v3094_v42 = vld [vmem:[#allocation2 + $0x3c] sm:$0xf] }
 0x36c   : > { %4797 = vmatmul.mubr.msk.bf16.gmra.mrb[8].mxu0 %vm1513_vm0, %v4382_v28  ;;  %v5081_v28 = vld [vmem:[#allocation2 + $0x18] sm:$0xff]   ;;  %v1847_v6 = vsel %vm5777_vm3, %v4311_v35, %v1846_v19  ;;  %v3352_v54 = vsel %vm1538_vm12, %v5873_v49, 0  ;;  %v3123_v43 = vshrl.u32 %v6028_v47, 16  ;;  %v3134_v49 = vshrl.u32 %v3088_v0, 16  ;;  %v5087_v35 = vld [vmem:[#allocation2 + $0x60] sm:$0xff]  }
 0x36d   : > { %4800 = vmatprep.mubr.msk.bf16.mxu0 %vm1513_vm0, %v4383_v34  ;;  %v1850_v50 = vsel %vm5777_vm3, %v1848_v59, %v1849_v8  ;;  %v3085_v34 = vld [vmem:[#allocation2 + $0x18] sm:$0xf]  ;;  %v3137_v1 = vshll.u32 %v3088_v0, 16  ;;  %v3143_v30 = vshll.u32 %v6037_v25, 16  ;;  %v3147_v18 = vshrl.u32 %v6037_v25, 16 }
 0x36e   : > { %v4320_v4 = vcombine.low %v1847_v6, %v1850_v50  ;;  %v3110_v57 = vshrl.u32 %v3085_v34, 16  ;;  %v3113_v63 = vshll.u32 %v3085_v34, 16  ;;  %v3125_v36 = vrot.slane %v3123_v43, 4  ;;  %v6077_v59 = vld [vmem:[#allocation2 + $0x38] sm:$0x1] }
 0x36f   : > { %4729 = vmatmul.mubr.msk.bf16.gmra.mrb[12].mxu1 %vm1513_vm0, %v4300_v29  ;;  %v3136_v52 = vrot.slane %v3134_v49, 4  ;;  %v3139_v27 = vrot.slane %v3137_v1, 5  ;;  %v6059_v39 = vrot.slane %v3143_v30, 5  ;;  %v3149_v61 = vrot.slane %v3147_v18, 4  ;;  %v6079_v53 = vld [vmem:[#allocation2 + $0x40] sm:$0xf] }
 0x370   : > { %4734 = vmatprep.mubr.msk.bf16.mxu1 %vm1513_vm0, %v4318_v21  ;;  %v3112_v41 = vrot.slane %v3110_v57, 4  ;;  %v3115_v62 = vrot.slane %v3113_v63, 5  ;;  %v3129_v23 = vshll.u32 %v6057_v5, 16  ;;  %v3161_v48 = vshll.u32 %v3091_v38, 16  ;;  %v3097_v50 = vld [vmem:[#allocation2 + $0x48] sm:$0xf] }
 0x371   : > { %v3167_v22 = vshll.u32 %v6061_v32, 16  ;;  %v3171_v19 = vshrl.u32 %v6061_v32, 16  ;;  %v3140_v29 = vor.u32 %v3139_v27, %v3136_v52  ;;  %v3150_v40 = vor.u32 %v3149_v61, %v6059_v39  ;;  %v5088_v27 = vld [vmem:[#allocation2 + $0x6c] sm:$0xff]  }
 0x372   : > { %v3116_v13 = vor.u32 %v3115_v62, %v3112_v41  ;;  %v3163_v6 = vrot.slane %v3161_v48, 5  ;;  %v3182_v55 = vshrl.u32 %v3094_v42, 16  ;;  %v3206_v57 = vshrl.u32 %v3097_v50, 16 }
 0x373   : > { %v3173_v31 = vrot.slane %v3171_v19, 4  ;;  %v3151_v16 = vrot.slane %v3150_v40, 4  ;;  %v3209_v63 = vshll.u32 %v3097_v50, 16  ;;  %v5090_v19 = vld [vmem:[#allocation2 + $0x18] sm:$0xff]   ;;  %vm4080_vm4 = vcmask 125952  }
 0x374   : > { %4801 = vmatmul.mubr.msk.bf16.gmra.mrb[12].mxu0 %vm1513_vm0, %v4384_v12  ;;  %v3117_v60 = vrot.slane %v3116_v13, 4  ;;  %v3131_v12 = vrot.slane %v3129_v23, 5  ;;  %v3184_v1 = vrot.slane %v3182_v55, 4  ;;  %v6115_v13 = vld [vmem:[#allocation2 + $0x50] sm:$0x1] }
 0x375   : > { %4806 = vmatprep.mubr.msk.bf16.mxu0 %vm1513_vm0, %v5081_v28  ;;  %v3211_v52 = vrot.slane %v3209_v63, 5  ;;  %v3225_v40 = vshll.u32 %v6115_v13, 16 }
 0x377   : > { %4735 = vmatmul.mubr.msk.bf16.vlgmr.msra.gmra.mrb[0].mxu1 %vm1513_vm0, %v4319_v20  ;;  %v3119_v20 = vshll.u32 %v6028_v47, 16  ;;  %v3227_v63 = vrot.slane %v3225_v40, 5 }
 0x378   : > { %4738 = vmatprep.mubr.msk.bf16.mxu1 %vm1513_vm0, %v4320_v4  ;;  %4751 = vmatpush3.bf16.msra.mxu1 %v2135_v33  ;;  %v6085_v4 = vrot.slane %v3167_v22, 5  ;;  %v6087_v33 = vld [vmem:[#allocation2 + $0x4c] sm:$0xf]  ;;  %v6121_v22 = vld [vmem:[#allocation2 + $0x58] sm:$0xf] }
 0x379   : > { %v6055_v26 = vrot.slane %v3119_v20, 5  ;;  %v3177_v20 = vshll.u32 %v6077_v59, 16  ;;  %v3215_v43 = vshll.u32 %v6087_v33, 16  ;;  %v3219_v41 = vshrl.u32 %v6087_v33, 16 }
 0x37a   : > { %v3174_v49 = vor.u32 %v3173_v31, %v6085_v4  ;;  %v3243_v50 = vshrl.u32 %v6121_v22, 16 }
 0x37b   : > { %v3126_v14 = vor.u32 %v3125_v36, %v6055_v26  ;;  %v3122_v34 = vsel %vm5551_vm15, %v3117_v60, %v6055_v26  ;;  %v6107_v26 = vld [vmem:[#allocation2 + $0x44] sm:$0x1]  ;;  %v3179_v61 = vrot.slane %v3177_v20, 5  ;;  %v3221_v23 = vrot.slane %v3219_v41, 4 }
 0x37c   : > { %4807 = vmatmul.mubr.msk.bf16.vlgmr.msra.gmra.mrb[0].mxu0 %vm1513_vm0, %v5082_v11  ;;  %v3141_v11 = vrot.slane %v3140_v29, 4  ;;  %v3175_v17 = vrot.slane %v3174_v49, 4  ;;  %v3606_v41 = vsel %vm1538_vm12, %v6035_v2, 0  ;;  %v6143_v49 = vld [vmem:[#allocation2 + $0x5c] sm:$0x1] }
 0x37d   : > { %4823 = vmatpush3.bf16.msra.mxu0 %v3352_v54  ;;  %4810 = vmatprep.mubr.msk.bf16.mxu0 %vm1513_vm0, %v5083_v56  ;;  %v3127_v8 = vrot.slane %v3126_v14, 4  ;;  %v3195_v56 = vshrl.u32 %v6079_v53, 16  ;;  %v5089_v54 = vld [vmem:[#allocation2 + $0xc] sm:$0xff]   ;;  %v6118_v14 = vrot.slane %v3215_v43, 5  ;;  %v3245_v43 = vrot.slane %v3243_v50, 4 }
 0x37e   : > { %5014 = vmatprep.subr.msk.bf16.mxu0 %vm1538_vm12, %v6035_v2  ;;  %v3146_v18 = vsel %vm5551_vm15, %v3141_v11, %v6059_v39  ;;  %v3180_v55 = vsel %vm5551_vm15, %v3175_v17, %v3179_v61  ;;  %v6155_v61 = vld [vmem:[#allocation2 + $0x68] sm:$0x1] }
 0x37f   : > { %4739 = vmatmul.mubr.msk.bf16.gmra.mrb[4].mxu1 %vm1513_vm0, %v4321_v45  ;;  %v6063_v45 = vld [vmem:[#allocation2 + $0x2c] sm:$0x1]  ;;  %v3132_v0 = vsel %vm5551_vm15, %v3127_v8, %v3131_v12  ;;  %v5091_v8 = vld [vmem:[#allocation2 + $0x24] sm:$0xff]   ;;  %v3222_v12 = vor.u32 %v3221_v23, %v6118_v14  ;;  %v5093_v23 = vld [vmem:[#allocation2 + $0x3c] sm:$0xff]  }
 0x380   : > { %4742 = vmatprep.mubr.msk.bf16.mxu1 %vm1513_vm0, %v4322_v7  ;;  %v3158_v7 = vshrl.u32 %v3091_v38, 16  ;;  %v3153_v21 = vshll.u32 %v6063_v45, 16  ;;  %v3208_v38 = vrot.slane %v3206_v57, 4  ;;  %v4411_v39 = vcombine.low %v3122_v34, %v3132_v0 }
 0x381   : > { %v3511_v58 = vrot.slane %v6063_v45, 5 }
 0x382   : > { %v3160_v28 = vrot.slane %v3158_v7, 4  ;;  %v3155_v44 = vrot.slane %v3153_v21, 5  ;;  %v3100_v7 = vld [vmem:[#allocation2 + $0x54] sm:$0xf]  ;;  %v3212_v29 = vor.u32 %v3211_v52, %v3208_v38  ;;  %v6145_v38 = vld [vmem:[#allocation2 + $0x70] sm:$0xf] }
 0x383   : > { %v3230_v21 = vshrl.u32 %v3100_v7, 16  ;;  %v5092_v52 = vld [vmem:[#allocation2 + $0x30] sm:$0xff]  }
 0x384   : > { %4811 = vmatmul.mubr.msk.bf16.gmra.mrb[4].mxu0 %vm1513_vm0, %v5084_v51  ;;  %v3164_v62 = vor.u32 %v3163_v6, %v3160_v28  ;;  %v3156_v51 = vsel %vm5551_vm15, %v3151_v16, %v3155_v44  ;;  %v3233_v28 = vshll.u32 %v3100_v7, 16  ;;  %v3239_v6 = vshll.u32 %v6121_v22, 16 }
 0x385   : > { %4814 = vmatprep.mubr.msk.bf16.mxu0 %vm1513_vm0, %v5085_v37  ;;  %v3197_v37 = vrot.slane %v3195_v56, 4  ;;  %v3213_v57 = vrot.slane %v3212_v29, 4 }
 0x386   : > { %v3165_v48 = vrot.slane %v3164_v62, 4  ;;  %v3235_v0 = vrot.slane %v3233_v28, 5  ;;  %v3241_v20 = vrot.slane %v3239_v6, 5 }
 0x387   : > { %4743 = vmatmul.mubr.msk.bf16.gmra.mrb[8].mxu1 %vm1513_vm0, %v4323_v24  ;;  %v3185_v24 = vshll.u32 %v3094_v42, 16  ;;  %v3103_v42 = vld [vmem:[#allocation2 + $0x60] sm:$0xf]  ;;  %v3218_v2 = vsel %vm5551_vm15, %v3213_v57, %v6118_v14  ;;  %v3291_v14 = vshrl.u32 %v6145_v38, 16 }
 0x388   : > { %4746 = vmatprep.mubr.msk.bf16.mxu1 %vm1513_vm0, %v4324_v46  ;;  %v3191_v46 = vshll.u32 %v6079_v53, 16  ;;  %v3170_v31 = vsel %vm5551_vm15, %v3165_v48, %v6085_v4  ;;  %v3254_v11 = vshrl.u32 %v3103_v42, 16  ;;  %v3257_v16 = vshll.u32 %v3103_v42, 16 }
 0x389   : > { %v3187_v30 = vrot.slane %v3185_v24, 5  ;;  %v3223_v4 = vrot.slane %v3222_v12, 4  ;;  %v4413_v62 = vcombine.low %v3170_v31, %v3180_v55  ;;  %v3246_v17 = vor.u32 %v3245_v43, %v3241_v20 }
 0x38a   : > { %v6113_v36 = vrot.slane %v3191_v46, 5  ;;  %v3293_v31 = vrot.slane %v3291_v14, 4  ;;  %v3501_v43 = vrot.slane %v6028_v47, 5 }
 0x38b   : > { %v3188_v15 = vor.u32 %v3187_v30, %v3184_v1  ;;  %v3106_v1 = vld [vmem:[#allocation2 + $0x6c] sm:$0xf]  ;;  %v3256_v30 = vrot.slane %v3254_v11, 4  ;;  %v3228_v7 = vsel %vm5551_vm15, %v3223_v4, %v3227_v63  ;;  %v6167_v11 = vld [vmem:[#allocation2 + $0x74] sm:$0x1] }
 0x38c   : > { %4815 = vmatmul.mubr.msk.bf16.gmra.mrb[8].mxu0 %vm1513_vm0, %v5086_v9  ;;  %v4412_v9 = vcombine.low %v3146_v18, %v3156_v51  ;;  %v3198_v60 = vor.u32 %v3197_v37, %v6113_v36  ;;  %v3259_v18 = vrot.slane %v3257_v16, 5  ;;  %v5094_v16 = vld [vmem:[#allocation2 + $0x48] sm:$0xff]  }
 0x38d   : > { %4818 = vmatprep.mubr.msk.bf16.mxu0 %vm1513_vm0, %v5087_v35  ;;  %v6125_v35 = vld [vmem:[#allocation2 + $0x64] sm:$0xf]  ;;  %v3189_v24 = vrot.slane %v3188_v15, 4  ;;  %v3249_v15 = vshll.u32 %v6143_v49, 16 }
 0x38e   : > { %v3263_v44 = vshll.u32 %v6125_v35, 16  ;;  %v3267_v46 = vshrl.u32 %v6125_v35, 16  ;;  %v3199_v56 = vrot.slane %v3198_v60, 4  ;;  %v3260_v60 = vor.u32 %v3259_v18, %v3256_v30 }
 0x38f   : > { %4747 = vmatmul.mubr.msk.bf16.gmra.mrb[12].mxu1 %vm1513_vm0, %v4325_v3  ;;  %v3201_v3 = vshll.u32 %v6107_v26, 16  ;;  %v3251_v12 = vrot.slane %v3249_v15, 5 }
 0x390   : > { %4752 = vmatprep.mubr.msk.bf16.mxu1 %vm1513_vm0, %v5089_v54  ;;  %v3232_v54 = vrot.slane %v3230_v21, 4  ;;  %v3265_v51 = vrot.slane %v3263_v44, 5  ;;  %v3269_v37 = vrot.slane %v3267_v46, 4  ;;  %v4415_v21 = vcombine.low %v3218_v2, %v3228_v7  ;;  %v5095_v46 = vld [vmem:[#allocation2 + $0x54] sm:$0xff]  }
 0x391   : > { %v3203_v34 = vrot.slane %v3201_v3, 5  ;;  %v3281_v3 = vshll.u32 %v3106_v1, 16  ;;  %v3261_v55 = vrot.slane %v3260_v60, 4  ;;  %v3508_v2 = vrot.slane %v6037_v25, 5 }
 0x392   : > { %v3236_v48 = vor.u32 %v3235_v0, %v3232_v54  ;;  %v3270_v29 = vor.u32 %v3269_v37, %v3265_v51  ;;  %v3297_v54 = vshll.u32 %v6167_v11, 16  ;;  %v3518_v60 = vrot.slane %v6077_v59, 5 }
 0x393   : > { %v3283_v6 = vrot.slane %v3281_v3, 5  ;;  %v3266_v4 = vsel %vm5551_vm15, %v3261_v55, %v3265_v51  ;;  %v5096_v51 = vld [vmem:[#allocation2 + $0x60] sm:$0xff]   ;;  %v3529_v59 = vrot.slane %v6087_v33, 5 }
 0x394   : > { %4819 = vmatmul.mubr.msk.bf16.gmra.mrb[12].mxu0 %vm1513_vm0, %v5088_v27  ;;  %v3194_v27 = vsel %vm5551_vm15, %v3189_v24, %v6113_v36  ;;  %v3278_v36 = vshrl.u32 %v3106_v1, 16  ;;  %v3237_v42 = vrot.slane %v3236_v48, 4  ;;  %v3271_v24 = vrot.slane %v3270_v29, 4 }
 0x395   : > { %4824 = vmatprep.mubr.msk.bf16.mxu0 %vm1513_vm0, %v4411_v39  ;;  %v3204_v39 = vsel %vm5551_vm15, %v3199_v56, %v3203_v34  ;;  %v3299_v18 = vrot.slane %v3297_v54, 5  ;;  %v3515_v48 = vrot.slane %v6061_v32, 5  ;;  %v3531_v55 = vrot.slane %v3529_v59, 4 }
 0x396   : > { %v4414_v40 = vcombine.low %v3194_v27, %v3204_v39  ;;  %v3280_v28 = vrot.slane %v3278_v36, 4  ;;  %v3242_v44 = vsel %vm5551_vm15, %v3237_v42, %v3241_v20  ;;  %v3467_v20 = vld [vmem:[#allocation2 + $0x18] sm:$0xe]  ;;  %v3504_v27 = vrot.slane %v6057_v5, 5  ;;  %v3468_v5 = vld [vmem:[#allocation2 + $0x24] sm:$0xe] }
 0x397   : > { %4753 = vmatmul.mubr.msk.bf16.vlgmr.msra.gmra.mrb[0].mxu1 %vm1513_vm0, %v5090_v19  ;;  %v3287_v19 = vshll.u32 %v6145_v38, 16  ;;  %v4427_v37 = vrot.slane %v3467_v20, 9  ;;  %v4428_v3 = vrot.slane %v3468_v5, 9  ;;  %v3517_v25 = vrot.slane %v3515_v48, 4  ;;  %v3471_v42 = vld [vmem:[#allocation2 + $0x48] sm:$0xe] }
 0x398   : > { %4756 = vmatprep.mubr.msk.bf16.mxu1 %vm1513_vm0, %v5091_v8  ;;  %v3247_v8 = vrot.slane %v3246_v17, 4  ;;  %v3284_v57 = vor.u32 %v3283_v6, %v3280_v28  ;;  %v3469_v17 = vld [vmem:[#allocation2 + $0x30] sm:$0xe] }
 0x399   : > { %v3289_v50 = vrot.slane %v3287_v19, 5  ;;  %v3510_v19 = vrot.slane %v3508_v2, 4  ;;  %v4429_v14 = vrot.slane %v3469_v17, 9  ;;  %v3509_v32 = vsel %vm5777_vm3, %v4428_v3, %v3508_v2 }
 0x39a   : > { %v3252_v56 = vsel %vm5551_vm15, %v3247_v8, %v3251_v12  ;;  %v3285_v1 = vrot.slane %v3284_v57, 4  ;;  %v3519_v45 = vsel %vm5777_vm3, %v3517_v25, %v3518_v60 }
 0x39b   : > { %v3294_v63 = vor.u32 %v3293_v31, %v3289_v50  ;;  %v3512_v29 = vsel %vm5777_vm3, %v3510_v19, %v3511_v58  ;;  %v4431_v31 = vrot.slane %v3471_v42, 9 }
 0x39c   : > { %4825 = vmatmul.mubr.msk.bf16.vlgmr.msra.gmra.mrb[0].mxu0 %vm1513_vm0, %v4412_v9  ;;  %v3273_v9 = vshll.u32 %v6155_v61, 16  ;;  %v3290_v47 = vsel %vm5551_vm15, %v3285_v1, %v3289_v50  ;;  %v4437_v8 = vcombine.low %v3509_v32, %v3512_v29  ;;  %v3525_v50 = vrot.slane %v6107_v26, 5  ;;  %v3474_v1 = vld [vmem:[#allocation2 + $0x6c] sm:$0xe]  ;;  %v6262_v32 = vld [vmem:[%s6416_s6 + $0x2] ss:$0 sm:$0xff] }
 0x39d   : > { %4841 = vmatpush3.bf16.msra.mxu0 %v3606_v41  ;;  %4828 = vmatprep.mubr.msk.bf16.mxu0 %vm1513_vm0, %v4413_v62  ;;  %v4416_v41 = vcombine.low %v3242_v44, %v3252_v56  ;;  %v3295_v30 = vrot.slane %v3294_v63, 4  ;;  %v3472_v44 = vld [vmem:[#allocation2 + $0x54] sm:$0xe] }
 0x39e   : > { %v3275_v34 = vrot.slane %v3273_v9, 5  ;;  %v3522_v9 = vrot.slane %v6079_v53, 5  ;;  %v3532_v53 = vrot.slane %v6115_v13, 5  ;;  %v3543_v13 = vrot.slane %v6125_v35, 5 }
 0x39f   : > { %4757 = vmatmul.mubr.msk.bf16.gmra.mrb[4].mxu1 %vm1513_vm0, %v5092_v52  ;;  %v3503_v52 = vrot.slane %v3501_v43, 4  ;;  %v3300_v39 = vsel %vm5551_vm15, %v3295_v30, %v3299_v18  ;;  %v4432_v63 = vrot.slane %v3472_v44, 9  ;;  %v4434_v18 = vrot.slane %v3474_v1, 9 }
 0x3a0   : > { %4760 = vmatprep.mubr.msk.bf16.mxu1 %vm1513_vm0, %v5093_v23  ;;  %v3276_v0 = vsel %vm5551_vm15, %v3271_v24, %v3275_v34  ;;  %v3502_v23 = vsel %vm5777_vm3, %v4427_v37, %v3501_v43  ;;  %v4418_v15 = vcombine.low %v3290_v47, %v3300_v39  ;;  %v3524_v6 = vrot.slane %v3522_v9, 4  ;;  %v3787_v47 = vld [vmem:[%s6415_s5] sm:$0x3] }
 0x3a1   : > { %v4417_v62 = vcombine.low %v3266_v4, %v3276_v0  ;;  %v3505_v7 = vsel %vm5777_vm3, %v3503_v52, %v3504_v27  ;;  %v3536_v34 = vrot.slane %v6121_v22, 5  ;;  %v3533_v26 = vsel %vm5777_vm3, %v3531_v55, %v3532_v53  ;;  %5015 = vmatprep.subr.msk.bf16.mxu1 %vm1538_vm12, %v3787_v47 }
 0x3a2   : > { %v4436_v36 = vcombine.low %v3502_v23, %v3505_v7  ;;  %v3526_v33 = vsel %vm5777_vm3, %v3524_v6, %v3525_v50  ;;  %v3539_v4 = vrot.slane %v6143_v49, 5  ;;  %v3545_v43 = vrot.slane %v3543_v13, 4 }
 0x3a3   : > { %v3538_v54 = vrot.slane %v3536_v34, 4  ;;  %v3546_v22 = vrot.slane %v6155_v61, 5  ;;  %v3537_v20 = vsel %vm5777_vm3, %v4432_v63, %v3536_v34  ;;  %v3553_v52 = vrot.slane %v6167_v11, 5 }
 0x3a4   : > { %4829 = vmatmul.mubr.msk.bf16.gmra.mrb[4].mxu0 %vm1513_vm0, %v4414_v40  ;;  %v3516_v40 = vsel %vm5777_vm3, %v4429_v14, %v3515_v48  ;;  %v3813_v11 = vsel %vm1538_vm12, %v3787_v47, 0 }
 0x3a5   : > { %4832 = vmatprep.mubr.msk.bf16.mxu0 %vm1513_vm0, %v4415_v21  ;;  %v3470_v21 = vld [vmem:[#allocation2 + $0x3c] sm:$0xe]  ;;  %v4438_v12 = vcombine.low %v3516_v40, %v3519_v45  ;;  %v3540_v35 = vsel %vm5777_vm3, %v3538_v54, %v3539_v4  ;;  %v3547_v49 = vsel %vm5777_vm3, %v3545_v43, %v3546_v22  ;;  %4859 = vmatpush3.bf16.msra.mxu1 %v3813_v11  ;;  %v6267_v45 = vld [vmem:[%s6416_s6 + $0x3] ss:$0 sm:$0xff] }
 0x3a6   : > { %v4430_v28 = vrot.slane %v3470_v21, 9  ;;  %v4441_v61 = vcombine.low %v3537_v20, %v3540_v35 }
 0x3a7   : > { %4761 = vmatmul.mubr.msk.bf16.gmra.mrb[8].mxu1 %vm1513_vm0, %v5094_v16  ;;  %v3530_v16 = vsel %vm5777_vm3, %v4431_v31, %v3529_v59 }
 0x3a8   : > { %4764 = vmatprep.mubr.msk.bf16.mxu1 %vm1513_vm0, %v5095_v46  ;;  %v3523_v24 = vsel %vm5777_vm3, %v4430_v28, %v3522_v9  ;;  %v3473_v46 = vld [vmem:[#allocation2 + $0x60] sm:$0xe]  ;;  %v4440_v57 = vcombine.low %v3530_v16, %v3533_v26 }
 0x3a9   : > { %v4439_v56 = vcombine.low %v3523_v24, %v3526_v33  ;;  %v4433_v0 = vrot.slane %v3473_v46, 9 }
 0x3ac   : > { %4833 = vmatmul.mubr.msk.bf16.gmra.mrb[8].mxu0 %vm1513_vm0, %v4416_v41  ;;  %v3550_v41 = vrot.slane %v6145_v38, 5 }
 0x3ad   : > { %4836 = vmatprep.mubr.msk.bf16.mxu0 %vm1513_vm0, %v4417_v62  ;;  %v3544_v62 = vsel %vm5777_vm3, %v4433_v0, %v3543_v13 }
 0x3ae   : > { %v4442_v30 = vcombine.low %v3544_v62, %v3547_v49  ;;  %v3552_v37 = vrot.slane %v3550_v41, 4  ;;  %v3551_v38 = vsel %vm5777_vm3, %v4434_v18, %v3550_v41 }
 0x3af   : > { %4765 = vmatmul.mubr.msk.bf16.gmra.mrb[12].mxu1 %vm1513_vm0, %v5096_v51 }
 0x3b0   : > { %v3554_v27 = vsel %vm5777_vm3, %v3552_v37, %v3553_v52 }
 0x3b1   : > { %v4443_v51 = vcombine.low %v3551_v38, %v3554_v27 }
 0x3b4   : > { %4837 = vmatmul.mubr.msk.bf16.gmra.mrb[12].mxu0 %vm1513_vm0, %v4418_v15 }
 0x3b5   : > { %4842 = vmatprep.mubr.msk.bf16.mxu0 %vm1513_vm0, %v4436_v36 }
 0x3bc   : > { %4843 = vmatmul.mubr.msk.bf16.vlgmr.msra.gmra.mrb[0].mxu0 %vm1513_vm0, %v4437_v8 }
 0x3bd   : > { %4846 = vmatprep.mubr.msk.bf16.mxu0 %vm1513_vm0, %v4438_v12 }
 0x3c4   : > { %4847 = vmatmul.mubr.msk.bf16.gmra.mrb[4].mxu0 %vm1513_vm0, %v4439_v56 }
 0x3c5   : > { %4850 = vmatprep.mubr.msk.bf16.mxu0 %vm1513_vm0, %v4440_v57 }
 0x3cc   : > { %4851 = vmatmul.mubr.msk.bf16.gmra.mrb[8].mxu0 %vm1513_vm0, %v4441_v61 }
 0x3cd   : > { %4854 = vmatprep.mubr.msk.bf16.mxu0 %vm1513_vm0, %v4442_v30 }
 0x3d4   : > { %4855 = vmatmul.mubr.msk.bf16.gmra.mrb[12].mxu0 %vm1513_vm0, %v4443_v51 }
 0x46a   : > { %v4754_v39 = vpop.f32.mrb[0].mxu1 }
 0x46b   : > { %v2171_v2 = vpop.f32.mrb[1].mxu1 }
 0x46c   : > { %v4755_v23 = vpop.f32.mrb[2].mxu1 }
 0x46d   : > { %v2174_v7 = vpop.f32.mrb[3].mxu1 }
 0x472   : > { %v4758_v5 = vpop.f32.mrb[4].mxu1 }
 0x473   : > { %v2187_v48 = vpop.f32.mrb[5].mxu1 }
 0x474   : > { %v4759_v10 = vpop.f32.mrb[6].mxu1 }
 0x475   : > { %v2190_v17 = vpop.f32.mrb[7].mxu1 }
 0x47a   : > { %v4762_v15 = vpop.f32.mrb[8].mxu1 }
 0x47b   : > { %v2203_v36 = vpop.f32.mrb[9].mxu1 }
 0x47c   : > { %v4763_v3 = vpop.f32.mrb[10].mxu1 }
 0x47d   : > { %v2206_v19 = vpop.f32.mrb[11].mxu1 }
 0x482   : > { %v6251_v58 = vpop.f32.mrb[12].mxu1 }
 0x483   : > { %v6253_v14 = vpop.f32.mrb[13].mxu1 }
 0x484   : > { %v6255_v25 = vpop.f32.mrb[14].mxu1 }
 0x485   : > { %v6257_v60 = vpop.f32.mrb[15].mxu1 }
 0x48f   : > { %v4844_v29 = vpop.f32.mrb[0].mxu0 }
 0x490   : > { %v4878_v9 = vadd.f32 %v4844_v29, %v4754_v39  ;;  %v3642_v40 = vpop.f32.mrb[1].mxu0 }
 0x491   : > { %v4879_v21 = vadd.f32 %v3642_v40, %v2171_v2  ;;  %v4845_v59 = vpop.f32.mrb[2].mxu0 }
 0x492   : > { %v3727_v42 = vmul.f32 %v4878_v9, %v6262_v32  ;;  %v4880_v8 = vadd.f32 %v4845_v59, %v4755_v23  ;;  %v3645_v12 = vpop.f32.mrb[3].mxu0 }
 0x493   : > { %v3725_v28 = vmul.f32 %v4879_v21, %v6262_v32  ;;  %v4881_v6 = vadd.f32 %v3645_v12, %v2174_v7 }
 0x494   : > { %v3747_v50 = vadd.f32 %v6267_v45, %v3727_v42  ;;  %v3728_v31 = vmul.f32 %v4880_v8, %v6262_v32 }
 0x495   : > { %v3745_v55 = vadd.f32 %v6267_v45, %v3725_v28  ;;  %v3726_v53 = vmul.f32 %v4881_v6, %v6262_v32 }
 0x496   : > { %v3748_v24 = vadd.f32 %v6267_v45, %v3728_v31  ;;  %v3763_v16 = vmax.f32 %v3747_v50, 0.0 }
 0x497   : > { %v3746_v33 = vadd.f32 %v6267_v45, %v3726_v53  ;;  %v4848_v34 = vpop.f32.mrb[4].mxu0  ;;  %v3761_v46 = vmax.f32 %v3745_v55, 0.0 }
 0x498   : > { %v3764_v26 = vmax.f32 %v3748_v24, 0.0  ;;  %v4882_v44 = vadd.f32 %v4848_v34, %v4758_v5  ;;  %v3658_v13 = vpop.f32.mrb[5].mxu0 }
 0x499   : > { %v3762_v56 = vmax.f32 %v3746_v33, 0.0  ;;  %v4883_v57 = vadd.f32 %v3658_v13, %v2187_v48  ;;  %v4849_v63 = vpop.f32.mrb[6].mxu0 }
 0x49a   : > { %v3778_v54 = vpack.c.bf16 %v3764_v26, %v3763_v16  ;;  %v3731_v4 = vmul.f32 %v4882_v44, %v6262_v32  ;;  %v4884_v0 = vadd.f32 %v4849_v63, %v4759_v10  ;;  %v3661_v43 = vpop.f32.mrb[7].mxu0 }
 0x49b   : > { %v3777_v22 = vpack.c.bf16 %v3762_v56, %v3761_v46  ;;  %v3729_v20 = vmul.f32 %v4883_v57, %v6262_v32  ;;  %v4885_v35 = vadd.f32 %v3661_v43, %v2190_v17 }
 0x49c   : > { %v3751_v41 = vadd.f32 %v6267_v45, %v3731_v4  ;;  %v3732_v62 = vmul.f32 %v4884_v0, %v6262_v32  ;;  %v4556_v4 = vld [vmem:[%s5271_s20 + $0x8] sm:$0xff]   ;;  %v4525_v0 = vld [vmem:[%s5271_s20] sm:$0xff]  }
 0x49d   : > { %v3749_v49 = vadd.f32 %v6267_v45, %v3729_v20  ;;  %v3730_v1 = vmul.f32 %v4885_v35, %v6262_v32  ;;  %4860 = vmatprep.mubr.msk.bf16.mxu1 %vm1513_vm0, %v3777_v22  ;;  %v4530_v20 = vunpack.c.l.bf16 %v4556_v4 }
 0x49e   : > { %v3752_v61 = vadd.f32 %v6267_v45, %v3732_v62  ;;  %4861 = vmatmul.mubr.msk.bf16.vlgmr.msra.gmra.mrb[16].mxu1 %vm1513_vm0, %v3778_v54  ;;  %v3767_v37 = vmax.f32 %v3751_v41, 0.0  ;;  %v4526_v62 = vunpack.c.l.bf16 %v4525_v0 }
 0x49f   : > { %v3750_v30 = vadd.f32 %v6267_v45, %v3730_v1  ;;  %v4852_v18 = vpop.f32.mrb[8].mxu0  ;;  %v3765_v51 = vmax.f32 %v3749_v49, 0.0 }
 0x4a0   : > { %v3768_v52 = vmax.f32 %v3752_v61, 0.0  ;;  %v4886_v38 = vadd.f32 %v4852_v18, %v4762_v15  ;;  %v3674_v27 = vpop.f32.mrb[9].mxu0 }
 0x4a1   : > { %v3766_v47 = vmax.f32 %v3750_v30, 0.0  ;;  %v4887_v11 = vadd.f32 %v3674_v27, %v2203_v36  ;;  %v4853_v39 = vpop.f32.mrb[10].mxu0  ;;  %v4531_v30 = vunpack.c.h.bf16 %v4556_v4 }
 0x4a2   : > { %v3780_v2 = vpack.c.bf16 %v3768_v52, %v3767_v37  ;;  %v3735_v23 = vmul.f32 %v4886_v38, %v6262_v32  ;;  %v4888_v7 = vadd.f32 %v4853_v39, %v4763_v3  ;;  %v3677_v5 = vpop.f32.mrb[11].mxu0  ;;  %v4527_v38 = vunpack.c.h.bf16 %v4525_v0  ;;  %v4558_v39 = vld [vmem:[%s5271_s20 + $0x18] sm:$0xff]  }
 0x4a3   : > { %v3779_v48 = vpack.c.bf16 %v3766_v47, %v3765_v51  ;;  %v3733_v10 = vmul.f32 %v4887_v11, %v6262_v32  ;;  %v4889_v17 = vadd.f32 %v3677_v5, %v2206_v19 }
 0x4a4   : > { %v3755_v29 = vadd.f32 %v6267_v45, %v3735_v23  ;;  %v3736_v9 = vmul.f32 %v4888_v7, %v6262_v32  ;;  %v4557_v7 = vld [vmem:[%s5271_s20 + $0x10] sm:$0xff]  }
 0x4a5   : > { %v3753_v15 = vadd.f32 %v6267_v45, %v3733_v10  ;;  %v3734_v40 = vmul.f32 %v4889_v17, %v6262_v32  ;;  %4864 = vmatprep.mubr.msk.bf16.mxu1 %vm1513_vm0, %v3779_v48 }
 0x4a6   : > { %v3756_v36 = vadd.f32 %v6267_v45, %v3736_v9  ;;  %4865 = vmatmul.mubr.msk.bf16.gmra.mrb[20].mxu1 %vm1513_vm0, %v3780_v2  ;;  %v3771_v59 = vmax.f32 %v3755_v29, 0.0 }
 0x4a7   : > { %v3754_v3 = vadd.f32 %v6267_v45, %v3734_v40  ;;  %v4856_v21 = vpop.f32.mrb[12].mxu0  ;;  %v3769_v12 = vmax.f32 %v3753_v15, 0.0  ;;  %v4538_v15 = vunpack.c.l.bf16 %v4558_v39 }
 0x4a8   : > { %v3772_v42 = vmax.f32 %v3756_v36, 0.0  ;;  %v4890_v19 = vadd.f32 %v4856_v21, %v6251_v58  ;;  %v3690_v8 = vpop.f32.mrb[13].mxu0 }
 0x4a9   : > { %v3770_v28 = vmax.f32 %v3754_v3, 0.0  ;;  %v4891_v6 = vadd.f32 %v3690_v8, %v6253_v14  ;;  %v4857_v50 = vpop.f32.mrb[14].mxu0 }
 0x4aa   : > { %v3782_v31 = vpack.c.bf16 %v3772_v42, %v3771_v59  ;;  %v3739_v55 = vmul.f32 %v4890_v19, %v6262_v32  ;;  %v4892_v53 = vadd.f32 %v4857_v50, %v6255_v25  ;;  %v3693_v24 = vpop.f32.mrb[15].mxu0  ;;  %v4534_v59 = vunpack.c.l.bf16 %v4557_v7 }
 0x4ab   : > { %v3781_v33 = vpack.c.bf16 %v3770_v28, %v3769_v12  ;;  %v3737_v34 = vmul.f32 %v4891_v6, %v6262_v32  ;;  %v4893_v16 = vadd.f32 %v3693_v24, %v6257_v60  ;;  %v4539_v28 = vunpack.c.h.bf16 %v4558_v39 }
 0x4ac   : > { %v3759_v26 = vadd.f32 %v6267_v45, %v3739_v55  ;;  %v3740_v58 = vmul.f32 %v4892_v53, %v6262_v32  ;;  %v4535_v53 = vunpack.c.h.bf16 %v4557_v7 }
 0x4ad   : > { %v3757_v44 = vadd.f32 %v6267_v45, %v3737_v34  ;;  %v3738_v14 = vmul.f32 %v4893_v16, %v6262_v32  ;;  %4868 = vmatprep.mubr.msk.bf16.mxu1 %vm1513_vm0, %v3781_v33  ;;  %v6316_v32 = vld [vmem:[%s6417_s7] ss:$0 sm:$0xff] }
 0x4ae   : > { %v3760_v25 = vadd.f32 %v6267_v45, %v3740_v58  ;;  %4869 = vmatmul.mubr.msk.bf16.gmra.mrb[24].mxu1 %vm1513_vm0, %v3782_v31  ;;  %v3775_v46 = vmax.f32 %v3759_v26, 0.0  ;;  %v4560_v26 = vld [vmem:[%s5271_s20 + $0x28] sm:$0xff]  }
 0x4af   : > { %v3758_v13 = vadd.f32 %v6267_v45, %v3738_v14  ;;  %v3773_v56 = vmax.f32 %v3757_v44, 0.0  ;;  %v6323_v45 = vld [vmem:[%s6417_s7 + $0x1] ss:$0 sm:$0xff] }
 0x4b0   : > { %v3776_v60 = vmax.f32 %v3760_v25, 0.0  ;;  %v4559_v14 = vld [vmem:[%s5271_s20 + $0x20] sm:$0xff]  }
 0x4b1   : > { %v3774_v57 = vmax.f32 %v3758_v13, 0.0 }
 0x4b2   : > { %v3784_v63 = vpack.c.bf16 %v3776_v60, %v3775_v46 }
 0x4b3   : > { %v3783_v54 = vpack.c.bf16 %v3774_v57, %v3773_v56 }
 0x4b5   : > { %4872 = vmatprep.mubr.msk.bf16.mxu1 %vm1513_vm0, %v3783_v54 }
 0x4b6   : > { %4873 = vmatmul.mubr.msk.bf16.gmra.mrb[28].mxu1 %vm1513_vm0, %v3784_v63  ;;  %v4546_v63 = vunpack.c.l.bf16 %v4560_v26 }
 0x571   : > { %v4862_v43 = vpop.f32.mrb[16].mxu1 }
 0x572   : > { %v3918_v22 = vmul.f32 %v4862_v43, %v6316_v32  ;;  %v3849_v35 = vpop.f32.mrb[17].mxu1 }
 0x573   : > { %v3916_v41 = vmul.f32 %v6316_v32, %v3849_v35  ;;  %v4863_v49 = vpop.f32.mrb[18].mxu1 }
 0x574   : > { %v3938_v1 = vadd.f32 %v6323_v45, %v3918_v22  ;;  %v3919_v61 = vmul.f32 %v4863_v49, %v6316_v32  ;;  %v3852_v18 = vpop.f32.mrb[19].mxu1  ;;  %v4542_v22 = vunpack.c.l.bf16 %v4559_v14  ;;  %v4547_v49 = vunpack.c.h.bf16 %v4560_v26 }
 0x575   : > { %v3936_v37 = vadd.f32 %v6323_v45, %v3916_v41  ;;  %v3917_v52 = vmul.f32 %v6316_v32, %v3852_v18 }
 0x576   : > { %v3986_v27 = vadd.f32 %v4530_v20, %v3938_v1  ;;  %v3939_v51 = vadd.f32 %v6323_v45, %v3919_v61 }
 0x577   : > { %v3984_v47 = vadd.f32 %v4526_v62, %v3936_v37  ;;  %v3937_v11 = vadd.f32 %v6323_v45, %v3917_v52  ;;  %v4543_v37 = vunpack.c.h.bf16 %v4559_v14 }
 0x578   : > { %v4002_v2 = vmax.f32 %v3986_v27, 0.0  ;;  %v3987_v23 = vadd.f32 %v4531_v30, %v3939_v51 }
 0x579   : > { %v4000_v5 = vmax.f32 %v3984_v47, 0.0  ;;  %v3985_v48 = vadd.f32 %v4527_v38, %v3937_v11  ;;  %v4866_v10 = vpop.f32.mrb[20].mxu1  ;;  %v4562_v47 = vld [vmem:[%s5271_s20 + $0x38] sm:$0xff]  }
 0x57a   : > { %v4510_v17 = vpack.c.bf16 %v4002_v2, %v4002_v2  ;;  %v4003_v29 = vmax.f32 %v3987_v23, 0.0  ;;  %v3922_v9 = vmul.f32 %v4866_v10, %v6316_v32  ;;  %v3865_v40 = vpop.f32.mrb[21].mxu1  ;;  %v4561_v2 = vld [vmem:[%s5271_s20 + $0x30] sm:$0xff]  }
 0x57b   : > { %v4508_v36 = vpack.c.bf16 %v4000_v5, %v4000_v5  ;;  %v4001_v3 = vmax.f32 %v3985_v48, 0.0  ;;  %v3920_v21 = vmul.f32 %v6316_v32, %v3865_v40  ;;  %v4867_v42 = vpop.f32.mrb[22].mxu1 }
 0x57c   : > { %4083 = vst.msk [vmem:[%s5276_s23 + $0x8] sm:$0xf] %vm4080_vm4, %v4510_v17  ;;  %v4511_v19 = vpack.c.bf16 %v4003_v29, %v4003_v29  ;;  %v3942_v8 = vadd.f32 %v6323_v45, %v3922_v9  ;;  %v3923_v12 = vmul.f32 %v4867_v42, %v6316_v32  ;;  %v3868_v6 = vpop.f32.mrb[23].mxu1  ;;  %v4554_v29 = vunpack.c.l.bf16 %v4562_v47 }
 0x57d   : > { %4081 = vst.msk [vmem:[%s5276_s23] sm:$0xf] %vm4080_vm4, %v4508_v36  ;;  %v4509_v50 = vpack.c.bf16 %v4001_v3, %v4001_v3  ;;  %v3940_v31 = vadd.f32 %v6323_v45, %v3920_v21  ;;  %v3921_v55 = vmul.f32 %v6316_v32, %v3868_v6  ;;  %v4550_v3 = vunpack.c.l.bf16 %v4561_v2 }
 0x57e   : > { %4084 = vst.msk [vmem:[%s5276_s23 + $0xc] sm:$0xf] %vm4080_vm4, %v4511_v19  ;;  %v3990_v24 = vadd.f32 %v4538_v15, %v3942_v8  ;;  %v3943_v33 = vadd.f32 %v6323_v45, %v3923_v12  ;;  %v4555_v8 = vunpack.c.h.bf16 %v4562_v47 }
 0x57f   : > { %4082 = vst.msk [vmem:[%s5276_s23 + $0x4] sm:$0xf] %vm4080_vm4, %v4509_v50  ;;  %v3988_v34 = vadd.f32 %v4534_v59, %v3940_v31  ;;  %v3941_v16 = vadd.f32 %v6323_v45, %v3921_v55  ;;  %v4551_v31 = vunpack.c.h.bf16 %v4561_v2 }
 0x580   : > { %v4006_v58 = vmax.f32 %v3990_v24, 0.0  ;;  %v3991_v44 = vadd.f32 %v4539_v28, %v3943_v33 }
 0x581   : > { %v4004_v25 = vmax.f32 %v3988_v34, 0.0  ;;  %v3989_v13 = vadd.f32 %v4535_v53, %v3941_v16  ;;  %v4870_v46 = vpop.f32.mrb[24].mxu1 }
 0x582   : > { %v4514_v60 = vpack.c.bf16 %v4006_v58, %v4006_v58  ;;  %v4007_v56 = vmax.f32 %v3991_v44, 0.0  ;;  %v3926_v57 = vmul.f32 %v4870_v46, %v6316_v32  ;;  %v3881_v54 = vpop.f32.mrb[25].mxu1 }
 0x583   : > { %v4512_v4 = vpack.c.bf16 %v4004_v25, %v4004_v25  ;;  %v4005_v0 = vmax.f32 %v3989_v13, 0.0  ;;  %v3924_v43 = vmul.f32 %v6316_v32, %v3881_v54  ;;  %v4871_v20 = vpop.f32.mrb[26].mxu1 }
 0x584   : > { %4087 = vst.msk [vmem:[%s5276_s23 + $0x18] sm:$0xf] %vm4080_vm4, %v4514_v60  ;;  %v4515_v35 = vpack.c.bf16 %v4007_v56, %v4007_v56  ;;  %v3946_v41 = vadd.f32 %v6323_v45, %v3926_v57  ;;  %v3927_v62 = vmul.f32 %v4871_v20, %v6316_v32  ;;  %v3884_v1 = vpop.f32.mrb[27].mxu1 }
 0x585   : > { %4085 = vst.msk [vmem:[%s5276_s23 + $0x10] sm:$0xf] %vm4080_vm4, %v4512_v4  ;;  %v4513_v61 = vpack.c.bf16 %v4005_v0, %v4005_v0  ;;  %v3944_v30 = vadd.f32 %v6323_v45, %v3924_v43  ;;  %v3925_v18 = vmul.f32 %v6316_v32, %v3884_v1 }
 0x586   : > { %4088 = vst.msk [vmem:[%s5276_s23 + $0x1c] sm:$0xf] %vm4080_vm4, %v4515_v35  ;;  %v3994_v52 = vadd.f32 %v4546_v63, %v3946_v41  ;;  %v3947_v38 = vadd.f32 %v6323_v45, %v3927_v62 }
 0x587   : > { %4086 = vst.msk [vmem:[%s5276_s23 + $0x14] sm:$0xf] %vm4080_vm4, %v4513_v61  ;;  %v3992_v27 = vadd.f32 %v4542_v22, %v3944_v30  ;;  %v3945_v51 = vadd.f32 %v6323_v45, %v3925_v18 }
 0x588   : > { %v4010_v11 = vmax.f32 %v3994_v52, 0.0  ;;  %v3995_v39 = vadd.f32 %v4547_v49, %v3947_v38 }
 0x589   : > { %v4008_v23 = vmax.f32 %v3992_v27, 0.0  ;;  %v3993_v7 = vadd.f32 %v4543_v37, %v3945_v51  ;;  %v4874_v5 = vpop.f32.mrb[28].mxu1 }
 0x58a   : > { %v4518_v48 = vpack.c.bf16 %v4010_v11, %v4010_v11  ;;  %v4011_v10 = vmax.f32 %v3995_v39, 0.0  ;;  %v3930_v17 = vmul.f32 %v4874_v5, %v6316_v32  ;;  %v3897_v9 = vpop.f32.mrb[29].mxu1 }
 0x58b   : > { %v4516_v15 = vpack.c.bf16 %v4008_v23, %v4008_v23  ;;  %v4009_v40 = vmax.f32 %v3993_v7, 0.0  ;;  %v3928_v36 = vmul.f32 %v6316_v32, %v3897_v9  ;;  %v4875_v21 = vpop.f32.mrb[30].mxu1 }
 0x58c   : > { %4091 = vst.msk [vmem:[%s5276_s23 + $0x28] sm:$0xf] %vm4080_vm4, %v4518_v48  ;;  %v4519_v59 = vpack.c.bf16 %v4011_v10, %v4011_v10  ;;  %v3950_v42 = vadd.f32 %v6323_v45, %v3930_v17  ;;  %v3931_v19 = vmul.f32 %v4875_v21, %v6316_v32  ;;  %v3900_v12 = vpop.f32.mrb[31].mxu1 }
 0x58d   : > { %4089 = vst.msk [vmem:[%s5276_s23 + $0x20] sm:$0xf] %vm4080_vm4, %v4516_v15  ;;  %v4517_v28 = vpack.c.bf16 %v4009_v40, %v4009_v40  ;;  %v3948_v6 = vadd.f32 %v6323_v45, %v3928_v36  ;;  %v3929_v50 = vmul.f32 %v6316_v32, %v3900_v12 }
 0x58e   : > { %4092 = vst.msk [vmem:[%s5276_s23 + $0x2c] sm:$0xf] %vm4080_vm4, %v4519_v59  ;;  %v3998_v55 = vadd.f32 %v4554_v29, %v3950_v42  ;;  %v3951_v53 = vadd.f32 %v6323_v45, %v3931_v19 }
 0x58f   : > { %4090 = vst.msk [vmem:[%s5276_s23 + $0x24] sm:$0xf] %vm4080_vm4, %v4517_v28  ;;  %v3996_v24 = vadd.f32 %v4550_v3, %v3948_v6  ;;  %v3949_v33 = vadd.f32 %v6323_v45, %v3929_v50 }
 0x590   : > { %v4014_v34 = vmax.f32 %v3998_v55, 0.0  ;;  %v3999_v16 = vadd.f32 %v4555_v8, %v3951_v53 }
 0x591   : > { %v4012_v26 = vmax.f32 %v3996_v24, 0.0  ;;  %v3997_v58 = vadd.f32 %v4551_v31, %v3949_v33 }
 0x592   : > { %v4522_v32 = vpack.c.bf16 %v4014_v34, %v4014_v34  ;;  %v4015_v44 = vmax.f32 %v3999_v16, 0.0 }
 0x593   : > { %v4520_v14 = vpack.c.bf16 %v4012_v26, %v4012_v26  ;;  %v4013_v25 = vmax.f32 %v3997_v58, 0.0 }
 0x594   : > { %4095 = vst.msk [vmem:[%s5276_s23 + $0x38] sm:$0xf] %vm4080_vm4, %v4522_v32  ;;  %v4523_v13 = vpack.c.bf16 %v4015_v44, %v4015_v44 }
 0x595   : > { %4093 = vst.msk [vmem:[%s5276_s23 + $0x30] sm:$0xf] %vm4080_vm4, %v4520_v14  ;;  %v4521_v46 = vpack.c.bf16 %v4013_v25, %v4013_v25 }
 0x596   : > { %4096 = vst.msk [vmem:[%s5276_s23 + $0x3c] sm:$0xf] %vm4080_vm4, %v4523_v13 }
 0x597   : > { %4094 = vst.msk [vmem:[%s5276_s23 + $0x34] sm:$0xf] %vm4080_vm4, %v4521_v46 }
 0x598 PF: > { %s18_s9 = sadd.s32 1, %s5135_s9   ;;  %s6445_s27 = smov %s5127_s29 }
 0x599   : > { %p15_p0 = scmp.ge.s32.totalorder %s18_s9, 6   ;;  %s6446_s28 = smov %s5131_s30 }
 0x59a   : > { %s6447_s29 = smov %s6450_s10  ;;  %s6448_s30 = smov %s6454_s11 }
 0x59b   :  { %17 = sbr.rel (!%p15_p0) target bundleno = 3 (0x3), region = 116 }

</bundles_post_ra>
